<compile_context>
chip_gen: v6e
topology: v6e:2x2x1
jax: 0.10.0
libtpu: 0.0.40
codegen_flags: <defaults>
</compile_context>

<pallas_src>
import numpy as np
import jax
import jax.numpy as jnp
from jax.experimental import pallas as pl
from jax.experimental.pallas import tpu as pltpu


def _pool_matrix(in_size, out_size):
    """(out_size, in_size) matrix implementing torch adaptive_avg_pool1d."""
    m = np.zeros((out_size, in_size), np.float32)
    for i in range(out_size):
        start = (i * in_size) // out_size
        end = -(-((i + 1) * in_size) // out_size)  # ceil
        m[i, start:end] = 1.0 / (end - start)
    return m


def _round_up(n, m):
    return -(-n // m) * m


def _vmem_footprint(ct, HW, HoWo, itemsize):
    """Padded VMEM bytes for one grid step, incl. double buffering."""
    x_blk = _round_up(ct, 8) * _round_up(HW, 128) * itemsize * 2   # input (x2 bufs)
    k_blk = _round_up(HW, 8) * _round_up(HoWo, 128) * 4 * 2        # pooling matrix
    o_blk = _round_up(ct, 8) * _round_up(HoWo, 128) * itemsize * 2  # output (x2 bufs)
    return x_blk + k_blk + o_blk


def _pick_channel_tile(C, HW, HoWo, itemsize, batch,
                       budget_bytes=8 << 20, min_steps=4):
    """Channel tile: divisor of C, sublane-aligned (or == C), padded footprint
    within budget, preferring >= min_steps total grid steps, then the largest
    block for DMA efficiency."""
    cands = [d for d in range(1, C + 1)
             if C % d == 0 and (d % 8 == 0 or d == C)]
    fitting = [d for d in cands
               if _vmem_footprint(d, HW, HoWo, itemsize) <= budget_bytes]
    if not fitting:
        fitting = [min(cands)]
    ct = max(fitting, key=lambda d: (min(batch * (C // d), min_steps), d))
    return ct, _vmem_footprint(ct, HW, HoWo, itemsize)


def _pool_kernel(x_ref, kron_ref, o_ref):
    """x_ref: (1, ct, H*W)  kron_ref: (H*W, Ho*Wo)  o_ref: (1, ct, Ho*Wo).
    One MXU matmul does the full 2-D adaptive average pool."""
    o_ref[0] = jnp.dot(
        x_ref[0], kron_ref[...],
        preferred_element_type=jnp.float32,
        precision=jax.lax.Precision.HIGHEST,
    ).astype(o_ref.dtype)


def adaptive_avg_pool2d(x, out_hw):
    """PyTorch-exact adaptive average pooling of an NCHW tensor on TPU."""
    B, C, H, W = x.shape
    Ho, Wo = out_hw
    if (H, W) == (Ho, Wo):          # identity windows
        return x

    HW, HoWo = H * W, Ho * Wo
    # Kronecker pooling matrix: out[c, i*Wo+j] = sum_{h,w} Ph[i,h]*Pw[j,w]*x[c,h*W+w]
    kron_t = jnp.asarray(np.kron(_pool_matrix(H, Ho), _pool_matrix(W, Wo)).T)

    x_flat = x.reshape(B, C, HW)    # free reshape (contiguous NCHW)
    ct, footprint = _pick_channel_tile(C, HW, HoWo, x.dtype.itemsize, batch=B)
    vmem_limit = int(min(max(2 * footprint, 4 << 20), 32 << 20))

    out = pl.pallas_call(
        _pool_kernel,
        out_shape=jax.ShapeDtypeStruct((B, C, HoWo), x.dtype),
        grid=(B, C // ct),
        in_specs=[
            pl.BlockSpec((1, ct, HW), lambda b, c: (b, c, 0)),
            pl.BlockSpec((HW, HoWo), lambda b, c: (0, 0)),
        ],
        out_specs=pl.BlockSpec((1, ct, HoWo), lambda b, c: (b, c, 0)),
        compiler_params=pltpu.CompilerParams(
            dimension_semantics=("parallel", "parallel"),
            vmem_limit_bytes=vmem_limit),
    )(x_flat, kron_t)

    return out.reshape(B, C, Ho, Wo)


def pyramid_pool_agg(inputs, stride=2):
    """PyramidPoolAgg.forward: pool every level to the strided size of the
    last level and concatenate along channels (NCHW)."""
    _, _, H, W = inputs[-1].shape
    Ho = (H - 1) // stride + 1
    Wo = (W - 1) // stride + 1
    pooled = [adaptive_avg_pool2d(x, (Ho, Wo)) for x in inputs]
    # Final channel concat of the tiny pooled outputs is a trivial copy in XLA.
    return jnp.concatenate(pooled, axis=1)


if __name__ == "__main__":
    key = jax.random.PRNGKey(0)
    k1, k2, k3 = jax.random.split(key, 3)
    # Small NCHW feature pyramid; last level sets the target resolution:
    # Ho = (15 - 1)//2 + 1 = 8, Wo = 8.  Mixes divisible (32->8, 16->8) and
    # non-divisible (15->8) spatial sizes to exercise adaptive windows.
    inputs = [
        jax.random.normal(k1, (2, 4, 32, 32), jnp.float32),
        jax.random.normal(k2, (2, 8, 16, 16), jnp.float32),
        jax.random.normal(k3, (2, 16, 15, 15), jnp.float32),
    ]

    out = pyramid_pool_agg(inputs, stride=2)
    out = jax.block_until_ready(out)

    # Pure-numpy reference (float64) for correctness.
    def ref_pool(x, Ho, Wo):
        x = np.asarray(x, np.float64)
        B, C, H, W = x.shape
        r = np.zeros((B, C, Ho, Wo), np.float64)
        for i in range(Ho):
            hs, he = (i * H) // Ho, -(-((i + 1) * H) // Ho)
            for j in range(Wo):
                ws, we = (j * W) // Wo, -(-((j + 1) * W) // Wo)
                r[:, :, i, j] = x[:, :, hs:he, ws:we].mean(axis=(2, 3))
        return r

    Ho = (inputs[-1].shape[2] - 1) // 2 + 1
    Wo = (inputs[-1].shape[3] - 1) // 2 + 1
    ref = np.concatenate([ref_pool(x, Ho, Wo) for x in inputs], axis=1)

    assert out.shape == ref.shape and out.dtype == inputs[0].dtype
    np.testing.assert_allclose(np.asarray(out), ref, rtol=1e-5, atol=1e-5)
    print("KERNEL_OK")
</pallas_src>

<mosaic_0001>
module attributes {stable_mosaic.version = 11 : i64} {
  func.func @_pool_kernel(%arg0: i32, %arg1: i32, %arg2: memref<1x4x1024xf32, #tpu.memory_space<vmem>>, %arg3: memref<1024x64xf32, #tpu.memory_space<vmem>>, %arg4: memref<1x4x64xf32, #tpu.memory_space<vmem>>) attributes {dimension_semantics = [#tpu.dimension_semantics<parallel>, #tpu.dimension_semantics<parallel>], iteration_bounds = array<i64: 2, 1>, scalar_prefetch = 0 : i64, scratch_operands = 0 : i64, tpu.core_type = #tpu.core_type<tc>, window_params = [{transform_indices = @transform_0, window_bounds = array<i64: 1, 4, 1024>}, {pipeline_mode = #tpu.pipeline_mode<synchronous>, transform_indices = @transform_1, window_bounds = array<i64: 1024, 64>}, {transform_indices = @transform_2, window_bounds = array<i64: 1, 4, 64>}]} {
    %c0 = arith.constant 0 : index
    %c0_0 = arith.constant 0 : index
    %c0_1 = arith.constant 0 : index
    %0 = vector.load %arg2[%c0, %c0_0, %c0_1] : memref<1x4x1024xf32, #tpu.memory_space<vmem>>, vector<1x4x1024xf32>
    %1 = vector.shape_cast %0 : vector<1x4x1024xf32> to vector<4x1024xf32>
    %c0_2 = arith.constant 0 : index
    %c0_3 = arith.constant 0 : index
    %2 = vector.load %arg3[%c0_2, %c0_3] : memref<1024x64xf32, #tpu.memory_space<vmem>>, vector<1024x64xf32>
    %cst = arith.constant dense<0.000000e+00> : vector<4x64xf32>
    %3 = tpu.matmul %1, %2, %cst {dimension_numbers = #tpu.dot_dimension_numbers<[1], [0], [0], [1], [0, 0, 1, 1], [], []>, precision = #tpu.contract_precision<fp32>} : vector<4x1024xf32>, vector<1024x64xf32>, vector<4x64xf32> -> vector<4x64xf32>
    %c0_4 = arith.constant 0 : index
    %c0_5 = arith.constant 0 : index
    %c0_6 = arith.constant 0 : index
    %4 = vector.load %arg4[%c0_4, %c0_5, %c0_6] : memref<1x4x64xf32, #tpu.memory_space<vmem>>, vector<1x4x64xf32>
    %5 = vector.shape_cast %4 : vector<1x4x64xf32> to vector<4x64xf32>
    %6 = vector.shape_cast %3 : vector<4x64xf32> to vector<1x4x64xf32>
    tpu.vector_store %arg4[%c0_4, %c0_5, %c0_6], %6 {strides = array<i32>} : memref<1x4x64xf32, #tpu.memory_space<vmem>>, vector<1x4x64xf32>,
    return
  }
  func.func @transform_0(%arg0: i32, %arg1: i32) -> (i32, i32, i32) {
    %c0_i32 = arith.constant 0 : i32
    %c0_i32_0 = arith.constant 0 : i32
    return %arg0, %arg1, %c0_i32 : i32, i32, i32
  }
  func.func @transform_1(%arg0: i32, %arg1: i32) -> (i32, i32) {
    %c0_i32 = arith.constant 0 : i32
    %c0_i32_0 = arith.constant 0 : i32
    %c0_i32_1 = arith.constant 0 : i32
    return %c0_i32, %c0_i32_0 : i32, i32
  }
  func.func @transform_2(%arg0: i32, %arg1: i32) -> (i32, i32, i32) {
    %c0_i32 = arith.constant 0 : i32
    %c0_i32_0 = arith.constant 0 : i32
    return %arg0, %arg1, %c0_i32 : i32, i32, i32
  }
}

</mosaic_0001>

<bundles_post_ra>
// kernel: tpu_custom_call.1
= control target key start
LH: loop header
LB: loop body
LE: loop exit
PB: predicated region body
PF: predicated region fallthrough
CT: control target
= control target key end

     0   :  { %7 = vsyncpa [#allocation3], 0  ;;  %s7721_s0 = inlined_call_operand.vmem [shape: f32[2,4,1024], index: 0, kind: input, shape index: {}]   ;;  %s7722_s1 = inlined_call_operand.vmem [shape: f32[1024,64], index: 1, kind: input, shape index: {}]   ;;  %s7723_s2 = inlined_call_operand.hbm [shape: f32[2,4,64], index: 2, kind: output, shape index: {}]  }
   0x1   :  { %9 = vsyncpa [#allocation3 + $0x1], 0  ;;  %s4862_s9 = smov 0   ;;  %s4864_s10 = smov 0  }
   0x2   :  { %s4866_s11 = smov 0   ;;  %s4868_s12 = smov 0  }
   0x3   :  { %s4870_s13 = smov 0   ;;  %s4872_s14 = smov 0  }
   0x4 LB: > { %s3856_s15 = sadd.s32 4294967295, %s4844_s14   ;;  %s3857_s16 = sadd.s32 4294967294, %s4844_s14   ;;  %s4844_s14 = sphi %s4872_s14, %s15_s14   ;;  %s4840_s13 = sphi %s4870_s13, %s8460_s13   ;;  %s4836_s12 = sphi %s4868_s12, %s8459_s12   ;;  %s4832_s11 = sphi %s4866_s11, %s8458_s11   ;;  %s4828_s10 = sphi %s4864_s10, %s8457_s10   ;;  %s4824_s9 = sphi %s4862_s9, %s8456_s9  }
   0x5   : > { %s27_s17 = sadd.s32 1, %s4840_s13  ;;  %s85_s18 = sadd.s32 1, %s4832_s11 }
   0x6   : > { %p29_p0 = scmp.ge.s32.totalorder %s27_s17, 2  ;;  %p95_p1 = scmp.ne.s32.totalorder %s4832_s11, %s4828_s10 }
   0x7   : > { %p96_p2 = scmp.eq.s32.totalorder %s3856_s15, 1  ;;  %p101_p3 = scmp.ne.s32.totalorder %s4828_s10, %s4824_s9 }
   0x8   : > { %s8462_s17 = smov (%p29_p0, %s27_s17), 0  ;;  %p102_p5 = scmp.eq.s32.totalorder %s3857_s16, 1 }
   0x9   : > { %p4902_p4 = por %p96_p2, %p95_p1  ;;  %s80_s20 = ssub.s32 %s4840_s13, %s8462_s17 }
   0xa   : > { %p3860_p6 = scmp.ge.s32.totalorder %s4844_s14, 1  ;;  %p83_p7 = scmp.eq.s32.totalorder %s80_s20, 0 }
   0xb   : > { %p4909_p8 = por %p102_p5, %p101_p3  ;;  %p135_p9 = scmp.lt.s32.totalorder %s4844_s14, 3 }
   0xc   : > { %s4915_s22 = scalar_select %p83_p7, %s4832_s11, %s85_s18  }
   0xd   : > { %p136_p10 = pnand %p3860_p6, %p135_p9 }
   0xf   : > { %139 = sbr.rel (%p136_p10) target bundleno = 658 (0x292), region = 28 }
  0x14   : > { %v205_v0 = vld [vmem:[%s7722_s1 + $0xf8] sm:$0xff]  ;;  %v204_v2 = vld [vmem:[%s7722_s1 + $0xf0] sm:$0xff]  ;;  %v203_v7 = vld [vmem:[%s7722_s1 + $0xe8] sm:$0xff]  ;;  %p161_p11 = scmp.lt.s32.totalorder %s4836_s12, 1  ;;  %s158_s23 = sand.u32 1, %s4828_s10   ;;  %vm3762_vm0 = vcmask 519168  }
  0x15   : > { %v189_v1 = vld [vmem:[%s7722_s1 + $0x78] sm:$0xff]  ;;  %v4926_v3 = vand.u32 4294901760, %v205_v0  ;;  %v4930_v5 = vand.u32 4294901760, %v204_v2  ;;  %v188_v6 = vld [vmem:[%s7722_s1 + $0x70] sm:$0xff]  ;;  %v187_v8 = vld [vmem:[%s7722_s1 + $0x68] sm:$0xff]  ;;  %v4943_v10 = vand.u32 4294901760, %v203_v7 }
  0x16   : > { %v4928_v4 = vand.u32 4294901760, %v189_v1  ;;  %v4941_v9 = vand.u32 4294901760, %v188_v6  ;;  %v4945_v11 = vand.u32 4294901760, %v187_v8  ;;  %v202_v12 = vld [vmem:[%s7722_s1 + $0xe0] sm:$0xff]  ;;  %v201_v14 = vld [vmem:[%s7722_s1 + $0xd8] sm:$0xff]  ;;  %v4974_v20 = vld [vmem:[%s7722_s1 + $0xd0] sm:$0xff] }
  0x17   : > { %v186_v13 = vld [vmem:[%s7722_s1 + $0x60] sm:$0xff]  ;;  %3869 = vmatprep.subr.mxu0 %v4926_v3  ;;  %v4957_v15 = vand.u32 4294901760, %v202_v12  ;;  %v4961_v17 = vand.u32 4294901760, %v201_v14  ;;  %v4964_v18 = vsub.f32 %v205_v0, %v4926_v3  ;;  %v4969_v19 = vld [vmem:[%s7722_s1 + $0x58] sm:$0xff]  ;;  %v4979_v21 = vld [vmem:[%s7722_s1 + $0x50] sm:$0xff]  ;;  %v4989_v24 = vand.u32 4294901760, %v4974_v20 }
  0x18   : > { %v4959_v16 = vand.u32 4294901760, %v186_v13  ;;  %3870 = vmatpush3.msra.mxu0 %v4928_v4  ;;  %v4983_v22 = vand.u32 4294901760, %v4969_v19  ;;  %v4986_v23 = vsub.f32 %v189_v1, %v4928_v4  ;;  %v4992_v25 = vsub.f32 %v204_v2, %v4930_v5  ;;  %v4997_v26 = vld [vmem:[%s7722_s1 + $0xc8] sm:$0xff]  ;;  %v5007_v28 = vld [vmem:[%s7722_s1 + $0xc0] sm:$0xff]  ;;  %v5059_v46 = vld [vmem:[%s7722_s1 + $0xb8] sm:$0xff]  ;;  %s5197_s15 = scalar_select %p161_p11, %s4836_s12, 1 }
  0x19   : > { %v5002_v27 = vld [vmem:[%s7722_s1 + $0x48] sm:$0xff]  ;;  %3871 = vmatprep.subr.mxu0 %v4930_v5  ;;  %v7737_v29 = vand.u32 4294901760, %v4964_v18  ;;  %v5012_v30 = vand.u32 4294901760, %v4979_v21  ;;  %v5015_v31 = vsub.f32 %v188_v6, %v4941_v9  ;;  %v5018_v32 = vand.u32 4294901760, %v4997_v26  ;;  %v5032_v37 = vld [vmem:[%s7722_s1 + $0x40] sm:$0xff]  ;;  %v5072_v51 = vld [vmem:[%s7722_s1 + $0x38] sm:$0xff] }
  0x1a   : > { %3872 = vmatpush3.msra.mxu0 %v4941_v9  ;;  %v7736_v33 = vand.u32 4294901760, %v4986_v23  ;;  %v7734_v34 = vand.u32 4294901760, %v4992_v25  ;;  %v5024_v35 = vsub.f32 %v203_v7, %v4943_v10  ;;  %v5027_v36 = vand.u32 4294901760, %v5002_v27  ;;  %v5082_v56 = vld [vmem:[%s7722_s1 + $0xb0] sm:$0xff]  ;;  %v5112_v2 = vld [vmem:[%s7722_s1 + $0xa8] sm:$0xff]  ;;  %s3868_s28 = sshll.u32 %s5197_s15, 5 }
  0x1b   : > { %8001 = vst [vmem:[#allocation5_spill] sm:$0xff] %v5012_v30  ;;  %8002 = vst [vmem:[#allocation6_spill] sm:$0xff] %v5018_v32  ;;  %3873 = vmatprep.subr.mxu0 %v4943_v10  ;;  %v542_v38 = vsub.f32 %v4964_v18, %v7737_v29  ;;  %v7733_v39 = vand.u32 4294901760, %v5015_v31  ;;  %v5040_v40 = vsub.f32 %v187_v8, %v4945_v11  ;;  %v5043_v41 = vand.u32 4294901760, %v5007_v28  ;;  %v5097_v61 = vld [vmem:[%s7722_s1 + $0x30] sm:$0xff]  ;;  %s5302_s7 = scalar_lea.vmem %s7721_s0, %s3868_s28  ;;  %s3861_s24 = sshll.u32 %s158_s23, 2 }
  0x1c   : > { %8003 = vst [vmem:[#allocation7_spill] sm:$0xff] %v5027_v36  ;;  %3874 = vmatpush3.msra.mxu0 %v4945_v11  ;;  %v430_v42 = vsub.f32 %v4986_v23, %v7736_v33  ;;  %v549_v43 = vsub.f32 %v4992_v25, %v7734_v34  ;;  %v7731_v44 = vand.u32 4294901760, %v5024_v35  ;;  %v5054_v45 = vsub.f32 %v202_v12, %v4957_v15  ;;  %v5254_v33 = vld [vmem:[%s7722_s1 + $0x88] sm:$0xff]  ;;  %s3865_s25 = sshll.u32 %s4836_s12, 6  ;;  %s160_s26 = scalar_lea.vmem [#allocation2], %s3861_s24 }
  0x1d   : > { %8004 = vst [vmem:[#allocation8_spill] sm:$0xff] %v5043_v41  ;;  %3875 = vmatprep.subr.mxu0 %v4957_v15  ;;  %v543_v47 = vand.u32 4294901760, %v542_v38  ;;  %v437_v48 = vsub.f32 %v5015_v31, %v7733_v39  ;;  %v7729_v49 = vand.u32 4294901760, %v5040_v40  ;;  %v5067_v50 = vand.u32 4294901760, %v5032_v37  ;;  %s3779_s27 = sshll.u32 %s160_s26, 4  ;;  %s3777_s30 = scalar_lea.hbm %s7723_s2, %s3865_s25  ;;  %s3780_s27 = int_to_ptr.vmem [resolvable:$true] %s3779_s27 }
  0x1e   : > { %3876 = vmatpush3.msra.mxu0 %v4959_v16  ;;  %v431_v52 = vand.u32 4294901760, %v430_v42  ;;  %v550_v53 = vand.u32 4294901760, %v549_v43  ;;  %v556_v54 = vsub.f32 %v5024_v35, %v7731_v44  ;;  %v7728_v55 = vand.u32 4294901760, %v5054_v45  ;;  %v5227_v44 = vld [vmem:[%s7722_s1 + $0x90] sm:$0xff]  ;;  %s3765_s3 = scalar_lea.sflag [#allocation3], %s158_s23  ;;  %s4768_s4 = scalar_lea.vmem %s3780_s27, 64 }
  0x1f   : > { %8005 = vst [vmem:[#allocation9_spill] sm:$0xff] %v5067_v50  ;;  %3877 = vmatprep.subr.mxu0 %v4961_v17  ;;  %3904 = vmatprep.subr.mxu1 %v543_v47  ;;  %v438_v57 = vand.u32 4294901760, %v437_v48  ;;  %v444_v58 = vsub.f32 %v5040_v40, %v7729_v49  ;;  %v5089_v59 = vsub.f32 %v186_v13, %v4959_v16  ;;  %v5092_v60 = vand.u32 4294901760, %v5059_v46  ;;  %v5126_v13 = vld [vmem:[%s7722_s1 + $0x28] sm:$0xff]  ;;  %v5211_v49 = vld [vmem:[%s7722_s1 + $0x18] sm:$0xff]  ;;  %p4769_p12 = scmp.ne.s32.totalorder %s3780_s27, %s4768_s4  ;;  %s4846_s5 = smov [#allocation2]  }
  0x20   : > { %3878 = vmatpush3.msra.mxu0 %v4983_v22  ;;  %3905 = vmatpush3.msra.mxu1 %v431_v52  ;;  %v557_v62 = vand.u32 4294901760, %v556_v54  ;;  %v563_v63 = vsub.f32 %v5054_v45, %v7728_v55  ;;  %v5104_v0 = vsub.f32 %v201_v14, %v4961_v17  ;;  %v5107_v1 = vand.u32 4294901760, %v5072_v51  ;;  %v5153_v52 = vld [vmem:[%s7722_s1 + $0xa0] sm:$0xff]  ;;  %s4772_s12 = sshll.u32 %s4846_s5, 4  ;;  %s4773_s12 = int_to_ptr.vmem [resolvable:$false] %s4772_s12 }
  0x21   : > { %8006 = vst [vmem:[#allocation10_spill] sm:$0xff] %v5092_v60  ;;  %3879 = vmatprep.subr.mxu0 %v4989_v24  ;;  %3906 = vmatprep.subr.mxu1 %v550_v53  ;;  %v445_v6 = vand.u32 4294901760, %v444_v58  ;;  %v7727_v7 = vand.u32 4294901760, %v5089_v59  ;;  %v5118_v8 = vsub.f32 %v4969_v19, %v4983_v22  ;;  %v5121_v12 = vand.u32 4294901760, %v5082_v56  ;;  %p4770_p13 = pnand %p4769_p12, %p4902_p4  ;;  %s4774_s6 = scalar_lea.vmem %s4773_s12, 128 }
  0x22   : > { %8007 = vst [vmem:[#allocation11_spill] sm:$0xff] %v5107_v1  ;;  %3880 = vmatpush3.msra.mxu0 %v5012_v30  ;;  %3907 = vmatpush3.msra.mxu1 %v438_v57  ;;  %v564_v14 = vand.u32 4294901760, %v563_v63  ;;  %v7724_v38 = vand.u32 4294901760, %v5104_v0  ;;  %v5132_v42 = vsub.f32 %v4974_v20, %v4989_v24  ;;  %v5135_v19 = vand.u32 4294901760, %v5097_v61  ;;  %p4775_p1 = scmp.lt.s32.totalorder %s3780_s27, %s4773_s12  ;;  %p4776_p2 = scmp.lt.s32.totalorder %s4774_s6, %s4768_s4 }
  0x23   : > { %8008 = vst [vmem:[#allocation12_spill] sm:$0xff] %v5121_v12  ;;  %3881 = vmatprep.subr.mxu0 %v5018_v32  ;;  %3908 = vmatprep.subr.mxu1 %v557_v62  ;;  %v451_v43 = vsub.f32 %v5089_v59, %v7727_v7  ;;  %v7725_v47 = vand.u32 4294901760, %v5118_v8  ;;  %v5145_v48 = vsub.f32 %v4979_v21, %v5012_v30  ;;  %v5148_v20 = vand.u32 4294901760, %v5112_v2  ;;  %p4771_p0 = pneg %p4770_p13 }
  0x24   : > { %8009 = vst [vmem:[#allocation13_spill] sm:$0xff] %v5135_v19  ;;  %3882 = vmatpush3.msra.mxu0 %v5027_v36  ;;  %3909 = vmatpush3.msra.mxu1 %v445_v6  ;;  %v570_v53 = vsub.f32 %v5104_v0, %v7724_v38  ;;  %v7726_v54 = vand.u32 4294901760, %v5132_v42  ;;  %v5162_v21 = vsub.f32 %v4997_v26, %v5018_v32  ;;  %v5165_v57 = vand.u32 4294901760, %v5126_v13  ;;  %v5179_v26 = vld [vmem:[%s7722_s1 + $0x20] sm:$0xff]  ;;  %p4777_p3 = por %p4776_p2, %p4775_p1 }
  0x25   : > { %8010 = vst [vmem:[#allocation14_spill] sm:$0xff] %v5148_v20  ;;  %3883 = vmatprep.subr.mxu0 %v5043_v41  ;;  %3910 = vmatprep.subr.mxu1 %v564_v14  ;;  %v452_v58 = vand.u32 4294901760, %v451_v43  ;;  %v458_v62 = vsub.f32 %v5118_v8, %v7725_v47  ;;  %v7730_v63 = vand.u32 4294901760, %v5145_v48  ;;  %v5174_v6 = vsub.f32 %v5002_v27, %v5027_v36  ;;  %v5192_v27 = vld [vmem:[%s7722_s1 + $0x98] sm:$0xff] }
  0x26   : > { %8011 = vst [vmem:[#allocation15_spill] sm:$0xff] %v5165_v57  ;;  %3884 = vmatpush3.msra.mxu0 %v5067_v50  ;;  %v571_v38 = vand.u32 4294901760, %v570_v53  ;;  %v577_v14 = vsub.f32 %v5132_v42, %v7726_v54  ;;  %v7732_v43 = vand.u32 4294901760, %v5162_v21  ;;  %v5187_v47 = vand.u32 4294901760, %v5153_v52  ;;  %p4778_p5 = pnand %p4777_p3, %p4771_p0 }
  0x27   : > { %3911 = vmatpush3.msra.mxu1 %v452_v58  ;;  %3885 = vmatprep.subr.mxu0 %v5092_v60  ;;  %v459_v53 = vand.u32 4294901760, %v458_v62  ;;  %v465_v54 = vsub.f32 %v5145_v48, %v7730_v63  ;;  %v7735_v7 = vand.u32 4294901760, %v5174_v6  ;;  %v5206_v55 = vsub.f32 %v5007_v28, %v5043_v41 }
  0x28   : > { %8012 = vst [vmem:[#allocation16_spill] sm:$0xff] %v5187_v47  ;;  %3912 = vmatprep.subr.mxu1 %v571_v38  ;;  %3886 = vmatpush3.msra.mxu0 %v5107_v1  ;;  %v578_v58 = vand.u32 4294901760, %v577_v14  ;;  %v584_v62 = vsub.f32 %v5162_v21, %v7732_v43  ;;  %v5218_v63 = vand.u32 4294901760, %v5179_v26  ;;  %v5222_v28 = vsub.f32 %v5032_v37, %v5067_v50  ;;  %v5240_v37 = vld [vmem:[%s7722_s1 + $0x10] sm:$0xff] }
  0x29   : > { %3913 = vmatpush3.msra.mxu1 %v459_v53  ;;  %3887 = vmatprep.subr.mxu0 %v5121_v12  ;;  %v466_v38 = vand.u32 4294901760, %v465_v54  ;;  %v472_v14 = vsub.f32 %v5174_v6, %v7735_v7  ;;  %v7740_v43 = vand.u32 4294901760, %v5206_v55  ;;  %v5235_v39 = vand.u32 4294901760, %v5192_v27 }
  0x2a   : > { %8013 = vst [vmem:[#allocation17_spill] sm:$0xff] %v5218_v63  ;;  %3914 = vmatprep.subr.mxu1 %v578_v58  ;;  %3888 = vmatpush3.msra.mxu0 %v5135_v19  ;;  %v585_v53 = vand.u32 4294901760, %v584_v62  ;;  %v7741_v54 = vand.u32 4294901760, %v5222_v28  ;;  %v5246_v34 = vsub.f32 %v5059_v46, %v5092_v60  ;;  %v5249_v7 = vand.u32 4294901760, %v5211_v49 }
  0x2b   : > { %8014 = vst [vmem:[#allocation18_spill] sm:$0xff] %v5235_v39  ;;  %3915 = vmatpush3.msra.mxu1 %v466_v38  ;;  %3889 = vmatprep.subr.mxu0 %v5148_v20  ;;  %v473_v58 = vand.u32 4294901760, %v472_v14  ;;  %v591_v62 = vsub.f32 %v5206_v55, %v7740_v43  ;;  %v5263_v46 = vsub.f32 %v5072_v51, %v5107_v1  ;;  %v5266_v29 = vand.u32 4294901760, %v5227_v44  ;;  %v5283_v51 = vld [vmem:[%s7722_s1 + $0x8] sm:$0xff] }
  0x2c   : > { %8015 = vst [vmem:[#allocation19_spill] sm:$0xff] %v5249_v7  ;;  %3916 = vmatprep.subr.mxu1 %v585_v53  ;;  %3890 = vmatpush3.msra.mxu0 %v5165_v57  ;;  %v479_v38 = vsub.f32 %v5222_v28, %v7741_v54  ;;  %v5275_v60 = vsub.f32 %v5082_v56, %v5121_v12  ;;  %v5278_v43 = vand.u32 4294901760, %v5240_v37  ;;  %v5292_v56 = vand.u32 4294901760, %v5254_v33  ;;  %v5297_v12 = vld [vmem:[%s7722_s1 + $0x80] sm:$0xff] }
  0x2d   : > { %8016 = vst [vmem:[#allocation20_spill] sm:$0xff] %v5266_v29  ;;  %3917 = vmatpush3.msra.mxu1 %v473_v58  ;;  %3891 = vmatprep.subr.mxu0 %v5187_v47  ;;  %v592_v53 = vand.u32 4294901760, %v591_v62  ;;  %v5289_v14 = vsub.f32 %v5097_v61, %v5135_v19  ;;  %v8020_v62 = vand.u32 4294901760, %v5246_v34  ;;  %v5311_v19 = vsub.f32 %v5112_v2, %v5148_v20  ;;  %v5328_v2 = vld [vmem:[%s7722_s1] sm:$0xff] }
  0x2e   : > { %8017 = vst [vmem:[#allocation21_spill] sm:$0xff] %v5278_v43  ;;  %8019 = vst [vmem:[#allocation23_spill] sm:$0xff] %v5292_v56  ;;  %3892 = vmatpush3.msra.mxu0 %v5218_v63  ;;  %v480_v58 = vand.u32 4294901760, %v479_v38  ;;  %v7760_v54 = vand.u32 4294901760, %v5275_v60  ;;  %v8022_v1 = vand.u32 4294901760, %v5263_v46  ;;  %v5319_v41 = vand.u32 4294901760, %v5283_v51 }
  0x2f   : > { %8018 = vst [vmem:[#allocation22_spill] sm:$0xff] %v5289_v14  ;;  %v598_v61 = vsub.f32 %v5246_v34, %v8020_v62  ;;  %8021 = vst [vmem:[#allocation24_spill] sm:$0xff] %v5311_v19  ;;  %3918 = vmatprep.subr.mxu1 %v592_v53  ;;  %3893 = vmatprep.subr.mxu0 %v5235_v39  ;;  %v5323_v62 = vsub.f32 %v5126_v13, %v5165_v57  ;;  %v7765_v38 = vand.u32 4294901760, %v5311_v19  ;;  %v170_v13 = vld [vmem:[%s5302_s7] sm:$0xff] }
  0x30   : > { %v486_v50 = vsub.f32 %v5263_v46, %v8022_v1  ;;  %8023 = vst [vmem:[#allocation25_spill] sm:$0xff] %v5319_v41  ;;  %3919 = vmatpush3.msra.mxu1 %v480_v58  ;;  %3894 = vmatpush3.msra.mxu0 %v5249_v7  ;;  %v605_v1 = vsub.f32 %v5275_v60, %v7760_v54  ;;  %v5336_v20 = vand.u32 4294901760, %v5297_v12  ;;  %v8024_v36 = vand.u32 4294901760, %v5289_v14 }
  0x31   : > { %v599_v53 = vand.u32 4294901760, %v598_v61  ;;  %3895 = vmatprep.subr.mxu0 %v5266_v29  ;;  %v5346_v32 = vsub.f32 %v5153_v52, %v5187_v47  ;;  %v5353_v30 = vand.u32 4294901760, %v5328_v2  ;;  %v8025_v52 = vand.u32 4294901760, %v5323_v62 }
  0x32   : > { %v487_v57 = vand.u32 4294901760, %v486_v50  ;;  %v493_v58 = vsub.f32 %v5289_v14, %v8024_v36  ;;  %v606_v54 = vand.u32 4294901760, %v605_v1  ;;  %3896 = vmatpush3.msra.mxu0 %v5278_v43  ;;  %v612_v50 = vsub.f32 %v5311_v19, %v7765_v38 }
  0x33   : > { %3920 = vmatprep.subr.mxu1 %v599_v53  ;;  %v5357_v36 = vsub.f32 %v5179_v26, %v5218_v63  ;;  %3897 = vmatprep.subr.mxu0 %v5292_v56  ;;  %v500_v53 = vsub.f32 %v5323_v62, %v8025_v52  ;;  %v7770_v1 = vand.u32 4294901760, %v5346_v32  ;;  %v306_v47 = vcombine.high %v170_v13, %v170_v13 }
  0x34   : > { %3921 = vmatpush3.msra.mxu1 %v487_v57  ;;  %v494_v61 = vand.u32 4294901760, %v493_v58  ;;  %v613_v38 = vand.u32 4294901760, %v612_v50  ;;  %3898 = vmatpush3.msra.mxu0 %v5319_v41  ;;  %v5366_v14 = vand.u32 4294901760, %v170_v13  ;;  %v5370_v57 = vsub.f32 %v5192_v27, %v5235_v39 }
  0x35   : > { %3922 = vmatprep.subr.mxu1 %v606_v54  ;;  %v7771_v19 = vand.u32 4294901760, %v5357_v36  ;;  %v501_v26 = vand.u32 4294901760, %v500_v53  ;;  %3899 = vmatprep.subr.mxu0 %v5336_v20  ;;  %v619_v58 = vsub.f32 %v5346_v32, %v7770_v1  ;;  %v5376_v54 = vand.u32 4294901760, %v306_v47 }
  0x36   : > { %8026 = vst [vmem:[#allocation26_spill] sm:$0xff] %v5366_v14  ;;  %3923 = vmatpush3.msra.mxu1 %v494_v61  ;;  %v5380_v50 = vsub.f32 %v5211_v49, %v5249_v7  ;;  %3900 = vmatpush3.msra.mxu0 %v5353_v30  ;;  %v5388_v52 = vsub.f32 %v170_v13, %v5366_v14  ;;  %v8028_v13 = vand.u32 4294901760, %v5370_v57 }
  0x37   : > { %8027 = vst [vmem:[#allocation27_spill] sm:$0xff] %v5376_v54  ;;  %3924 = vmatprep.subr.mxu1 %v613_v38  ;;  %v507_v27 = vsub.f32 %v5357_v36, %v7771_v19  ;;  %v5392_v53 = vsub.f32 %v5227_v44, %v5266_v29  ;;  %v620_v1 = vand.u32 4294901760, %v619_v58  ;;  %v5395_v49 = vsub.f32 %v306_v47, %v5376_v54 }
  0x38   : > { %3925 = vmatpush3.msra.mxu1 %v501_v26  ;;  %3939 = vmatprep.subr.mxu0 %v4964_v18  ;;  %v7776_v38 = vand.u32 4294901760, %v5380_v50  ;;  %v5401_v19 = vsub.f32 %v5240_v37, %v5278_v43  ;;  %v626_v7 = vsub.f32 %v5370_v57, %v8028_v13  ;;  %v7779_v44 = vand.u32 4294901760, %v5388_v52 }
  0x39   : > { %v508_v61 = vand.u32 4294901760, %v507_v27  ;;  %651 = vmatprep.mubr.f32.mxu1 %v5376_v54  ;;  %3926 = vmatprep.subr.mxu1 %v620_v1  ;;  %v5416_v27 = vsub.f32 %v5254_v33, %v5292_v56  ;;  %v8029_v1 = vand.u32 4294901760, %v5392_v53  ;;  %v5426_v54 = vsub.f32 %v5283_v51, %v5319_v41 }
  0x3a   : > { %v514_v58 = vsub.f32 %v5380_v50, %v7776_v38  ;;  %v627_v13 = vand.u32 4294901760, %v626_v7  ;;  %v419_v26 = vsub.f32 %v5388_v52, %v7779_v44  ;;  %v8030_v38 = vand.u32 4294901760, %v5395_v49 }
  0x3b   : > { %3927 = vmatpush3.msra.mxu1 %v508_v61  ;;  %v633_v47 = vsub.f32 %v5392_v53, %v8029_v1  ;;  %v8031_v61 = vand.u32 4294901760, %v5401_v19  ;;  %v7789_v56 = vand.u32 4294901760, %v5416_v27  ;;  %v7788_v1 = vand.u32 4294901760, %v5426_v54 }
  0x3c   : > { %v413_v37 = vsub.f32 %v5395_v49, %v8030_v38  ;;  %v515_v33 = vand.u32 4294901760, %v514_v58  ;;  %3928 = vmatprep.subr.mxu1 %v627_v13  ;;  %v420_v44 = vand.u32 4294901760, %v419_v26  ;;  %v5438_v51 = vsub.f32 %v5297_v12, %v5336_v20 }
  0x3d   : > { %v521_v7 = vsub.f32 %v5401_v19, %v8031_v61  ;;  %v634_v43 = vand.u32 4294901760, %v633_v47  ;;  %v640_v38 = vsub.f32 %v5416_v27, %v7789_v56  ;;  %v5445_v58 = vsub.f32 %v5328_v2, %v5353_v30  ;;  %v8033_v2 = vld [vmem:[#allocation5_spill] sm:$0xff]  ;;  %v8035_v61 = vld [vmem:[#allocation6_spill] sm:$0xff]  ;;  %v8048_v56 = vld [vmem:[#allocation19_spill] sm:$0xff] }
  0x3e   : > { %v414_v41 = vand.u32 4294901760, %v413_v37  ;;  %3929 = vmatpush3.msra.mxu1 %v515_v33  ;;  %v528_v26 = vsub.f32 %v5426_v54, %v7788_v1  ;;  %v7787_v47 = vand.u32 4294901760, %v5438_v51  ;;  %v8047_v1 = vand.u32 4294901760, %v4964_v18 }
  0x3f   : > { %v522_v29 = vand.u32 4294901760, %v521_v7  ;;  %8032 = vst [vmem:[#allocation28_spill] sm:$0xff] %v5445_v58  ;;  %3930 = vmatprep.subr.mxu1 %v634_v43  ;;  %v641_v12 = vand.u32 4294901760, %v640_v38  ;;  %v7786_v37 = vand.u32 4294901760, %v5445_v58  ;;  %v8036_v7 = vld [vmem:[#allocation24_spill] sm:$0xff]  ;;  %v8037_v38 = vld [vmem:[#allocation7_spill] sm:$0xff] }
  0x40   : > { %415 = vmatprep.mubr.f32.mxu0 %v414_v41  ;;  %v529_v13 = vand.u32 4294901760, %v528_v26  ;;  %v647_v33 = vsub.f32 %v5438_v51, %v7787_v47  ;;  %v8038_v26 = vld [vmem:[#allocation8_spill] sm:$0xff]  ;;  %v8055_v18 = vand.u32 4294901760, %v5024_v35 }
  0x41   : > { %3931 = vmatpush3.msra.mxu1 %v522_v29  ;;  %421 = vmatmul.mubr.f32.vlgmr.msra.gmra.mxu0 %v420_v44  ;;  %v535_v43 = vsub.f32 %v5445_v58, %v7786_v37  ;;  %v8034_v44 = vld [vmem:[#allocation22_spill] sm:$0xff]  ;;  %v8045_v37 = vld [vmem:[#allocation15_spill] sm:$0xff]  ;;  %v8046_v47 = vld [vmem:[#allocation16_spill] sm:$0xff] }
  0x42   : > { %3940 = vmatpush3.msra.mxu0 %v4986_v23  ;;  %3932 = vmatprep.subr.mxu1 %v641_v12  ;;  %v648_v29 = vand.u32 4294901760, %v647_v33  ;;  %v8039_v12 = vld [vmem:[#allocation9_spill] sm:$0xff]  ;;  %v8041_v33 = vld [vmem:[#allocation11_spill] sm:$0xff] }
  0x43   : > { %3941 = vmatprep.subr.mxu0 %v4992_v25  ;;  %3933 = vmatpush3.msra.mxu1 %v529_v13  ;;  %v536_v41 = vand.u32 4294901760, %v535_v43  ;;  %v8040_v13 = vld [vmem:[#allocation10_spill] sm:$0xff]  ;;  %v8042_v43 = vld [vmem:[#allocation12_spill] sm:$0xff] }
  0x44   : > { %3942 = vmatpush3.msra.mxu0 %v5015_v31  ;;  %788 = vmatprep.mubr.f32.mxu0 %v5395_v49 }
  0x45   : > { %3943 = vmatprep.subr.mxu0 %v5024_v35  ;;  %3934 = vmatprep.subr.mxu1 %v648_v29  ;;  %v8043_v29 = vld [vmem:[#allocation13_spill] sm:$0xff]  ;;  %v8061_v35 = vand.u32 4294901760, %v5388_v52 }
  0x46   : > { %3944 = vmatpush3.msra.mxu0 %v5040_v40  ;;  %3935 = vmatpush3.msra.mxu1 %v536_v41  ;;  %v8044_v41 = vld [vmem:[#allocation14_spill] sm:$0xff] }
  0x47   : > { %3945 = vmatprep.subr.mxu0 %v5054_v45  ;;  %653 = vmatmul.mubr.f32.vlgmr.msra.gmra.mxu1 %v5366_v14  ;;  %v8049_v14 = vand.u32 4294901760, %v4986_v23  ;;  %v8057_v23 = vand.u32 4294901760, %v5040_v40  ;;  %v8063_v40 = vand.u32 4294901760, %v5118_v8 }
  0x48   : > { %3946 = vmatpush3.msra.mxu0 %v5089_v59  ;;  %3974 = vmatprep.subr.mxu1 %v4926_v3 }
  0x49   : > { %3947 = vmatprep.subr.mxu0 %v5104_v0  ;;  %3975 = vmatpush3.msra.mxu1 %v4928_v4 }
  0x4a   : > { %3948 = vmatpush3.msra.mxu0 %v5118_v8  ;;  %3976 = vmatprep.subr.mxu1 %v4930_v5  ;;  %v8068_v8 = vand.u32 4294901760, %v5206_v55 }
  0x4b   : > { %3949 = vmatprep.subr.mxu0 %v5132_v42  ;;  %3977 = vmatpush3.msra.mxu1 %v4941_v9 }
  0x4c   : > { %3950 = vmatpush3.msra.mxu0 %v5145_v48  ;;  %3978 = vmatprep.subr.mxu1 %v4943_v10 }
  0x4d   : > { %3951 = vmatprep.subr.mxu0 %v5162_v21  ;;  %3979 = vmatpush3.msra.mxu1 %v4945_v11 }
  0x4e   : > { %3952 = vmatpush3.msra.mxu0 %v5174_v6  ;;  %3980 = vmatprep.subr.mxu1 %v4957_v15 }
  0x4f   : > { %3953 = vmatprep.subr.mxu0 %v5206_v55  ;;  %3981 = vmatpush3.msra.mxu1 %v4959_v16  ;;  %v236_v55 = vld [vmem:[%s7722_s1 + $0x1f0] sm:$0xff] }
  0x50   : > { %3954 = vmatpush3.msra.mxu0 %v5222_v28  ;;  %3982 = vmatprep.subr.mxu1 %v4961_v17 }
  0x51   : > { %3955 = vmatprep.subr.mxu0 %v5246_v34  ;;  %3983 = vmatpush3.msra.mxu1 %v4983_v22 }
  0x52   : > { %3956 = vmatpush3.msra.mxu0 %v5263_v46  ;;  %3984 = vmatprep.subr.mxu1 %v4989_v24 }
  0x53   : > { %3957 = vmatprep.subr.mxu0 %v5275_v60  ;;  %3985 = vmatpush3.msra.mxu1 %v8033_v2 }
  0x54   : > { %3958 = vmatpush3.msra.mxu0 %v8034_v44  ;;  %3986 = vmatprep.subr.mxu1 %v8035_v61 }
  0x55   : > { %3959 = vmatprep.subr.mxu0 %v8036_v7  ;;  %3987 = vmatpush3.msra.mxu1 %v8037_v38 }
  0x56   : > { %3960 = vmatpush3.msra.mxu0 %v5323_v62  ;;  %3988 = vmatprep.subr.mxu1 %v8038_v26 }
  0x57   : > { %3961 = vmatprep.subr.mxu0 %v5346_v32  ;;  %3989 = vmatpush3.msra.mxu1 %v8039_v12 }
  0x58   : > { %3962 = vmatpush3.msra.mxu0 %v5357_v36  ;;  %3990 = vmatprep.subr.mxu1 %v8040_v13 }
  0x59   : > { %3963 = vmatprep.subr.mxu0 %v5370_v57  ;;  %3991 = vmatpush3.msra.mxu1 %v8041_v33 }
  0x5a   : > { %3964 = vmatpush3.msra.mxu0 %v5380_v50  ;;  %3992 = vmatprep.subr.mxu1 %v8042_v43 }
  0x5b   : > { %3965 = vmatprep.subr.mxu0 %v5392_v53  ;;  %3993 = vmatpush3.msra.mxu1 %v8043_v29 }
  0x5c   : > { %3966 = vmatpush3.msra.mxu0 %v5401_v19  ;;  %3994 = vmatprep.subr.mxu1 %v8044_v41 }
  0x5d   : > { %3967 = vmatprep.subr.mxu0 %v5416_v27  ;;  %3995 = vmatpush3.msra.mxu1 %v8045_v37  ;;  %v8050_v37 = vld [vmem:[#allocation20_spill] sm:$0xff] }
  0x5e   : > { %3968 = vmatpush3.msra.mxu0 %v5426_v54  ;;  %3996 = vmatprep.subr.mxu1 %v8046_v47  ;;  %v8051_v47 = vand.u32 4294901760, %v4992_v25  ;;  %v8058_v25 = vand.u32 4294901760, %v5054_v45  ;;  %v8064_v45 = vand.u32 4294901760, %v5132_v42 }
  0x5f   : > { %3969 = vmatprep.subr.mxu0 %v5438_v51  ;;  %3997 = vmatpush3.msra.mxu1 %v5218_v63  ;;  %v8052_v63 = vld [vmem:[#allocation21_spill] sm:$0xff] }
  0x60   : > { %3970 = vmatpush3.msra.mxu0 %v5445_v58  ;;  %3998 = vmatprep.subr.mxu1 %v5235_v39  ;;  %v8053_v58 = vand.u32 4294901760, %v5015_v31  ;;  %v8054_v39 = vld [vmem:[#allocation23_spill] sm:$0xff]  ;;  %v8059_v31 = vand.u32 4294901760, %v5395_v49  ;;  %v218_v49 = vld [vmem:[%s7722_s1 + $0x160] sm:$0xff] }
  0x61   : > { %791 = vmatmul.mubr.f32.vlgmr.msra.gmra.mxu0 %v5388_v52  ;;  %4009 = vmatprep.subr.mxu0 %v8047_v1  ;;  %v8056_v1 = vld [vmem:[#allocation25_spill] sm:$0xff] }
  0x62   : > { %3999 = vmatpush3.msra.mxu1 %v8048_v56  ;;  %4010 = vmatpush3.msra.mxu0 %v8049_v14  ;;  %v8060_v14 = vand.u32 4294901760, %v5089_v59  ;;  %v8065_v59 = vand.u32 4294901760, %v5145_v48 }
  0x63   : > { %4000 = vmatprep.subr.mxu1 %v8050_v37  ;;  %4011 = vmatprep.subr.mxu0 %v8051_v47 }
  0x64   : > { %4001 = vmatpush3.msra.mxu1 %v8052_v63  ;;  %4012 = vmatpush3.msra.mxu0 %v8053_v58  ;;  %v8062_v58 = vand.u32 4294901760, %v5104_v0  ;;  %v8066_v0 = vand.u32 4294901760, %v5162_v21 }
  0x65   : > { %4002 = vmatprep.subr.mxu1 %v8054_v39  ;;  %4013 = vmatprep.subr.mxu0 %v8055_v18  ;;  %v233_v18 = vld [vmem:[%s7722_s1 + $0x1d8] sm:$0xff] }
  0x66   : > { %4003 = vmatpush3.msra.mxu1 %v8056_v1  ;;  %4014 = vmatpush3.msra.mxu0 %v8057_v23  ;;  %v8080_v23 = vand.u32 4294901760, %v5357_v36 }
  0x67   : > { %4004 = vmatprep.subr.mxu1 %v5336_v20  ;;  %4015 = vmatprep.subr.mxu0 %v8058_v25  ;;  %v8082_v25 = vand.u32 4294901760, %v5370_v57 }
  0x68   : > { %4005 = vmatpush3.msra.mxu1 %v5353_v30  ;;  %895 = vmatprep.mubr.f32.mxu1 %v8059_v31 }
  0x69   : > { %4016 = vmatpush3.msra.mxu0 %v8060_v14  ;;  %899 = vmatmul.mubr.f32.vlgmr.msra.gmra.mxu1 %v8061_v35  ;;  %v8083_v35 = vand.u32 4294901760, %v5380_v50 }
  0x6a   : > { %4017 = vmatprep.subr.mxu0 %v8062_v58  ;;  %4044 = vmatprep.subr.mxu1 %v4926_v3  ;;  %v221_v3 = vld [vmem:[%s7722_s1 + $0x178] sm:$0xff]  ;;  %v232_v58 = vld [vmem:[%s7722_s1 + $0x1d0] sm:$0xff] }
  0x6b   : > { %4018 = vmatpush3.msra.mxu0 %v8063_v40  ;;  %4045 = vmatpush3.msra.mxu1 %v4928_v4  ;;  %v8067_v4 = vand.u32 4294901760, %v5174_v6  ;;  %v5577_v42 = vand.u32 4294901760, %v221_v3  ;;  %v8073_v6 = vand.u32 4294901760, %v8034_v44  ;;  %v8085_v40 = vand.u32 4294901760, %v5392_v53 }
  0x6c   : > { %4019 = vmatprep.subr.mxu0 %v8064_v45  ;;  %4046 = vmatprep.subr.mxu1 %v4930_v5  ;;  %v237_v5 = vld [vmem:[%s7722_s1 + $0x1f8] sm:$0xff] }
  0x6d   : > { %4020 = vmatpush3.msra.mxu0 %v8065_v59  ;;  %4047 = vmatpush3.msra.mxu1 %v4941_v9  ;;  %v220_v9 = vld [vmem:[%s7722_s1 + $0x170] sm:$0xff]  ;;  %v5582_v48 = vand.u32 4294901760, %v237_v5 }
  0x6e   : > { %4021 = vmatprep.subr.mxu0 %v8066_v0  ;;  %4048 = vmatprep.subr.mxu1 %v4943_v10  ;;  %v8069_v10 = vand.u32 4294901760, %v5222_v28  ;;  %v5587_v21 = vand.u32 4294901760, %v220_v9  ;;  %v5607_v28 = vand.u32 4294901760, %v236_v55 }
  0x6f   : > { %4022 = vmatpush3.msra.mxu0 %v8067_v4  ;;  %4049 = vmatpush3.msra.mxu1 %v4945_v11  ;;  %v8070_v11 = vand.u32 4294901760, %v5246_v34  ;;  %v8072_v34 = vand.u32 4294901760, %v5275_v60  ;;  %v234_v60 = vld [vmem:[%s7722_s1 + $0x1e0] sm:$0xff]  ;;  %v5624_v47 = vsub.f32 %v237_v5, %v5582_v48  ;;  %v5709_v5 = vand.u32 4294901760, %v232_v58 }
  0x70   : > { %4023 = vmatprep.subr.mxu0 %v8068_v8  ;;  %4050 = vmatprep.subr.mxu1 %v4957_v15  ;;  %v8071_v15 = vand.u32 4294901760, %v5263_v46  ;;  %v5616_v46 = vsub.f32 %v220_v9, %v5587_v21 }
  0x71   : > { %4024 = vmatpush3.msra.mxu0 %v8069_v10  ;;  %4051 = vmatpush3.msra.mxu1 %v4959_v16  ;;  %v235_v16 = vld [vmem:[%s7722_s1 + $0x1e8] sm:$0xff]  ;;  %v7802_v36 = vand.u32 4294901760, %v5624_v47  ;;  %8090 = vst [vmem:[#allocation10_spill] sm:$0xff] %v5709_v5  ;;  %v8091_v10 = vand.u32 4294901760, %v5426_v54 }
  0x72   : > { %4025 = vmatprep.subr.mxu0 %v8070_v11  ;;  %4052 = vmatprep.subr.mxu1 %v4961_v17  ;;  %v219_v17 = vld [vmem:[%s7722_s1 + $0x168] sm:$0xff]  ;;  %v5618_v52 = vand.u32 4294901760, %v235_v16  ;;  %v7797_v31 = vand.u32 4294901760, %v5616_v46 }
  0x73   : > { %4026 = vmatpush3.msra.mxu0 %v8071_v15  ;;  %4053 = vmatpush3.msra.mxu1 %v4983_v22  ;;  %v5605_v22 = vsub.f32 %v221_v3, %v5577_v42  ;;  %v5629_v44 = vand.u32 4294901760, %v219_v17  ;;  %v231_v3 = vld [vmem:[%s7722_s1 + $0x1c8] sm:$0xff]  ;;  %v5707_v4 = vsub.f32 %v5624_v47, %v7802_v36  ;;  %v8094_v15 = vld [vmem:[#allocation16_spill] sm:$0xff] }
  0x74   : > { %4027 = vmatprep.subr.mxu0 %v8072_v34  ;;  %4054 = vmatprep.subr.mxu1 %v4989_v24  ;;  %v8074_v24 = vand.u32 4294901760, %v8036_v7  ;;  %8075 = vst [vmem:[#allocation5_spill] sm:$0xff] %v5618_v52  ;;  %v5634_v7 = vand.u32 4294901760, %v234_v60  ;;  %v5660_v14 = vsub.f32 %v235_v16, %v5618_v52  ;;  %v5714_v9 = vsub.f32 %v5616_v46, %v7797_v31  ;;  %v211_v36 = vld [vmem:[%s7722_s1 + $0x128] sm:$0xff] }
  0x75   : > { %4028 = vmatpush3.msra.mxu0 %v8073_v6  ;;  %4055 = vmatpush3.msra.mxu1 %v8033_v2  ;;  %v8076_v2 = vand.u32 4294901760, %v5323_v62  ;;  %8077 = vst [vmem:[#allocation22_spill] sm:$0xff] %v5629_v44  ;;  %v5642_v62 = vand.u32 4294901760, %v218_v49  ;;  %v5666_v57 = vsub.f32 %v219_v17, %v5629_v44  ;;  %v5730_v34 = vand.u32 4294901760, %v231_v3  ;;  %v214_v6 = vld [vmem:[%s7722_s1 + $0x140] sm:$0xff] }
  0x76   : > { %4029 = vmatprep.subr.mxu0 %v8074_v24  ;;  %4056 = vmatprep.subr.mxu1 %v8035_v61  ;;  %v8078_v61 = vand.u32 4294901760, %v5346_v32  ;;  %8079 = vst [vmem:[#allocation6_spill] sm:$0xff] %v5634_v7  ;;  %v217_v32 = vld [vmem:[%s7722_s1 + $0x158] sm:$0xff]  ;;  %v5679_v50 = vsub.f32 %v234_v60, %v5634_v7  ;;  %v7796_v8 = vand.u32 4294901760, %v5660_v14  ;;  %v8097_v60 = vld [vmem:[#allocation28_spill] sm:$0xff] }
  0x77   : > { %4030 = vmatpush3.msra.mxu0 %v8076_v2  ;;  %4057 = vmatpush3.msra.mxu1 %v8037_v38  ;;  %8081 = vst [vmem:[#allocation24_spill] sm:$0xff] %v5642_v62  ;;  %v7801_v38 = vand.u32 4294901760, %v5605_v22  ;;  %v5676_v45 = vand.u32 4294901760, %v217_v32  ;;  %v5685_v59 = vsub.f32 %v218_v49, %v5642_v62  ;;  %8095 = vst [vmem:[#allocation11_spill] sm:$0xff] %v5730_v34  ;;  %v8098_v24 = vand.u32 4294901760, %v8097_v60  ;;  %v8099_v49 = vld [vmem:[#allocation27_spill] sm:$0xff] }
  0x78   : > { %4031 = vmatprep.subr.mxu0 %v8078_v61  ;;  %4058 = vmatprep.subr.mxu1 %v8038_v26  ;;  %v5649_v26 = vsub.f32 %v236_v55, %v5607_v28  ;;  %v8093_v55 = vand.u32 4294901760, %v5438_v51  ;;  %v7798_v54 = vand.u32 4294901760, %v5679_v50  ;;  %v213_v51 = vld [vmem:[%s7722_s1 + $0x138] sm:$0xff]  ;;  %v210_v2 = vld [vmem:[%s7722_s1 + $0x120] sm:$0xff] }
  0x79   : > { %4032 = vmatpush3.msra.mxu0 %v8080_v23  ;;  %4059 = vmatpush3.msra.mxu1 %v8039_v12  ;;  %v216_v12 = vld [vmem:[%s7722_s1 + $0x150] sm:$0xff]  ;;  %8086 = vst [vmem:[#allocation8_spill] sm:$0xff] %v5676_v45  ;;  %v5690_v53 = vsub.f32 %v5605_v22, %v7801_v38  ;;  %v5728_v16 = vsub.f32 %v217_v32, %v5676_v45  ;;  %v230_v23 = vld [vmem:[%s7722_s1 + $0x1c0] sm:$0xff]  ;;  %v7800_v32 = vand.u32 4294901760, %v5685_v59 }
  0x7a   : > { %4033 = vmatprep.subr.mxu0 %v8082_v25  ;;  %4060 = vmatprep.subr.mxu1 %v8040_v13  ;;  %v5668_v13 = vand.u32 4294901760, %v233_v18  ;;  %v5693_v0 = vand.u32 4294901760, %v216_v12  ;;  %v8100_v25 = vld [vmem:[#allocation17_spill] sm:$0xff] }
  0x7b   : > { %4034 = vmatpush3.msra.mxu0 %v8083_v35  ;;  %4061 = vmatpush3.msra.mxu1 %v8041_v33  ;;  %v8087_v33 = vand.u32 4294901760, %v5401_v19  ;;  %v215_v19 = vld [vmem:[%s7722_s1 + $0x148] sm:$0xff]  ;;  %v8101_v35 = vld [vmem:[#allocation26_spill] sm:$0xff] }
  0x7c   : > { %8084 = vst [vmem:[#allocation7_spill] sm:$0xff] %v5668_v13  ;;  %4035 = vmatprep.subr.mxu0 %v8085_v40  ;;  %4062 = vmatprep.subr.mxu1 %v8042_v43  ;;  %v7799_v43 = vand.u32 4294901760, %v5649_v26  ;;  %8088 = vst [vmem:[#allocation9_spill] sm:$0xff] %v5693_v0  ;;  %v5722_v11 = vsub.f32 %v233_v18, %v5668_v13  ;;  %v5732_v17 = vand.u32 4294901760, %v215_v19  ;;  %v5863_v40 = vld [vmem:[%s5302_s7 + $0x8] sm:$0xff] }
  0x7d   : > { %4036 = vmatpush3.msra.mxu0 %v8087_v33  ;;  %4063 = vmatpush3.msra.mxu1 %v8043_v29  ;;  %v8089_v29 = vand.u32 4294901760, %v5416_v27  ;;  %v8092_v27 = vld [vmem:[#allocation15_spill] sm:$0xff]  ;;  %v5751_v18 = vsub.f32 %v216_v12, %v5693_v0 }
  0x7e   : > { %4064 = vmatprep.subr.mxu1 %v8044_v41  ;;  %v7795_v41 = vand.u32 4294901760, %v5666_v57  ;;  %8096 = vst [vmem:[#allocation12_spill] sm:$0xff] %v5732_v17  ;;  %1065 = vmatprep.mubr.f32.mxu0 %v8099_v49  ;;  %v5748_v61 = vsub.f32 %v5649_v26, %v7799_v43  ;;  %v5769_v12 = vld [vmem:[%s7722_s1 + $0x1b8] sm:$0xff]  ;;  %v7803_v60 = vand.u32 4294901760, %v5722_v11  ;;  %v5817_v43 = vsub.f32 %v231_v3, %v5730_v34 }
  0x7f   : > { %4037 = vmatprep.subr.mxu0 %v8089_v29  ;;  %4065 = vmatpush3.msra.mxu1 %v8092_v27  ;;  %v5764_v29 = vsub.f32 %v5660_v14, %v7796_v8  ;;  %v8102_v27 = vld [vmem:[#allocation18_spill] sm:$0xff]  ;;  %v7804_v8 = vand.u32 4294901760, %v5728_v16  ;;  %v5811_v31 = vand.u32 4294901760, %v5769_v12 }
  0x80   : > { %4038 = vmatpush3.msra.mxu0 %v8091_v10  ;;  %4066 = vmatprep.subr.mxu1 %v8094_v15  ;;  %v5772_v10 = vsub.f32 %v232_v58, %v5709_v5  ;;  %v5781_v15 = vand.u32 4294901760, %v214_v6  ;;  %v212_v58 = vld [vmem:[%s7722_s1 + $0x130] sm:$0xff] }
  0x81   : > { %4039 = vmatprep.subr.mxu0 %v8093_v55  ;;  %4067 = vmatpush3.msra.mxu1 %v8100_v25  ;;  %v5779_v55 = vsub.f32 %v5666_v57, %v7795_v41  ;;  %v5792_v25 = vsub.f32 %v215_v19, %v5732_v17  ;;  %v5799_v41 = vsub.f32 %v5679_v50, %v7798_v54  ;;  %v228_v54 = vld [vmem:[%s7722_s1 + $0x1b0] sm:$0xff] }
  0x82   : > { %4040 = vmatpush3.msra.mxu0 %v8098_v24  ;;  %4068 = vmatprep.subr.mxu1 %v8102_v27  ;;  %8103 = vst [vmem:[#allocation13_spill] sm:$0xff] %v5781_v15  ;;  %v5784_v24 = vand.u32 4294901760, %v213_v51  ;;  %v5794_v27 = vand.u32 4294901760, %v230_v23  ;;  %v5808_v19 = vsub.f32 %v5685_v59, %v7800_v32  ;;  %8107 = vst [vmem:[#allocation21_spill] sm:$0xff] %v5811_v31  ;;  %v5823_v32 = vand.u32 4294901760, %v212_v58 }
  0x83   : > { %1067 = vmatmul.mubr.f32.vlgmr.msra.gmra.mxu0 %v8101_v35  ;;  %4079 = vmatprep.subr.mxu0 %v5582_v48  ;;  %8105 = vst [vmem:[#allocation19_spill] sm:$0xff] %v5792_v25  ;;  %v5833_v3 = vsub.f32 %v214_v6, %v5781_v15  ;;  %v5852_v6 = vsub.f32 %v5728_v16, %v7804_v8  ;;  %v8115_v8 = vand.u32 4294901760, %v5751_v18 }
  0x84   : > { %8104 = vst [vmem:[#allocation14_spill] sm:$0xff] %v5784_v24  ;;  %4069 = vmatpush3.msra.mxu1 %v8048_v56  ;;  %4080 = vmatpush3.msra.mxu0 %v5577_v42  ;;  %8106 = vst [vmem:[#allocation20_spill] sm:$0xff] %v5794_v27  ;;  %v1412_v56 = vand.u32 4294901760, %v5748_v61  ;;  %v5841_v33 = vsub.f32 %v213_v51, %v5784_v24  ;;  %v227_v51 = vld [vmem:[%s7722_s1 + $0x1a8] sm:$0xff]  ;;  %v226_v61 = vld [vmem:[%s7722_s1 + $0x1a0] sm:$0xff] }
  0x85   : > { %4070 = vmatprep.subr.mxu1 %v8050_v37  ;;  %4081 = vmatprep.subr.mxu0 %v5607_v28  ;;  %8108 = vst [vmem:[#allocation23_spill] sm:$0xff] %v5823_v32  ;;  %8109 = vst [vmem:[#allocation25_spill] sm:$0xff] %v5833_v3  ;;  %v5838_v37 = vsub.f32 %v5722_v11, %v7803_v60  ;;  %v5854_v60 = vand.u32 4294901760, %v228_v54  ;;  %v5888_v38 = vsub.f32 %v5751_v18, %v8115_v8 }
  0x86   : > { %4071 = vmatpush3.msra.mxu1 %v8052_v63  ;;  %4082 = vmatpush3.msra.mxu0 %v5587_v21  ;;  %v5860_v63 = vsub.f32 %v230_v23, %v5794_v27  ;;  %v8118_v8 = vand.u32 4294901760, %v5707_v4  ;;  %v8120_v4 = vand.u32 4294901760, %v5817_v43 }
  0x87   : > { %4072 = vmatprep.subr.mxu1 %v8054_v39  ;;  %4083 = vmatprep.subr.mxu0 %v5618_v52  ;;  %8110 = vst [vmem:[#allocation15_spill] sm:$0xff] %v5854_v60  ;;  %v5869_v39 = vand.u32 4294901760, %v211_v36  ;;  %v5904_v52 = vand.u32 4294901760, %v226_v61 }
  0x88   : > { %4073 = vmatpush3.msra.mxu1 %v8056_v1  ;;  %4084 = vmatpush3.msra.mxu0 %v5629_v44  ;;  %8111 = vst [vmem:[#allocation16_spill] sm:$0xff] %v5860_v63  ;;  %v5883_v1 = vsub.f32 %v212_v58, %v5823_v32  ;;  %v307_v58 = vcombine.high %v5863_v40, %v5863_v40  ;;  %v1321_v44 = vand.u32 4294901760, %v5852_v6 }
  0x89   : > { %4074 = vmatprep.subr.mxu1 %v5336_v20  ;;  %4085 = vmatprep.subr.mxu0 %v5634_v7  ;;  %8112 = vst [vmem:[#allocation28_spill] sm:$0xff] %v5869_v39  ;;  %v8113_v20 = vand.u32 4294901760, %v5772_v10  ;;  %v5890_v7 = vand.u32 4294901760, %v210_v2  ;;  %v5920_v6 = vsub.f32 %v5817_v43, %v8120_v4  ;;  %v1328_v4 = vand.u32 4294901760, %v5888_v38  ;;  %v224_v38 = vld [vmem:[%s7722_s1 + $0x190] sm:$0xff] }
  0x8a   : > { %4075 = vmatpush3.msra.mxu1 %v5353_v30  ;;  %1169 = vmatprep.mubr.f32.mxu1 %v8099_v49  ;;  %8114 = vst [vmem:[#allocation27_spill] sm:$0xff] %v5883_v1  ;;  %v1433_v30 = vand.u32 4294901760, %v5838_v37  ;;  %v5895_v49 = vand.u32 4294901760, %v227_v51  ;;  %v5909_v37 = vsub.f32 %v5769_v12, %v5811_v31  ;;  %v8121_v12 = vand.u32 4294901760, %v5792_v25 }
  0x8b   : > { %v5880_v23 = vsub.f32 %v5772_v10, %v8113_v20  ;;  %8116 = vst [vmem:[#allocation17_spill] sm:$0xff] %v5890_v7  ;;  %4086 = vmatpush3.msra.mxu0 %v5642_v62  ;;  %1171 = vmatmul.mubr.f32.vlgmr.msra.gmra.mxu1 %v8101_v35  ;;  %v209_v20 = vld [vmem:[%s7722_s1 + $0x118] sm:$0xff]  ;;  %v5941_v62 = vsub.f32 %v228_v54, %v5854_v60  ;;  %v208_v54 = vld [vmem:[%s7722_s1 + $0x110] sm:$0xff] }
  0x8c   : > { %8117 = vst [vmem:[#allocation26_spill] sm:$0xff] %v5895_v49  ;;  %4087 = vmatprep.subr.mxu0 %v5668_v13  ;;  %4114 = vmatprep.subr.mxu1 %v8118_v8  ;;  %v8119_v13 = vand.u32 4294901760, %v5690_v53  ;;  %v5923_v8 = vsub.f32 %v211_v36, %v5869_v39  ;;  %v5928_v35 = vsub.f32 %v5792_v25, %v8121_v12  ;;  %v8123_v12 = vand.u32 4294901760, %v5714_v9 }
  0x8d   : > { %4088 = vmatpush3.msra.mxu0 %v5676_v45  ;;  %v225_v45 = vld [vmem:[%s7722_s1 + $0x198] sm:$0xff]  ;;  %v5938_v36 = vsub.f32 %v210_v2, %v5890_v7  ;;  %v8124_v53 = vand.u32 4294901760, %v5833_v3  ;;  %v5960_v2 = vsub.f32 %v227_v51, %v5895_v49  ;;  %v5962_v9 = vand.u32 4294901760, %v307_v58 }
  0x8e   : > { %4115 = vmatpush3.msra.mxu1 %v8119_v13  ;;  %4089 = vmatprep.subr.mxu0 %v5709_v5  ;;  %v1440_v13 = vand.u32 4294901760, %v5880_v23  ;;  %v8126_v23 = vand.u32 4294901760, %v5764_v29  ;;  %v5976_v25 = vand.u32 4294901760, %v5863_v40  ;;  %v8129_v51 = vand.u32 4294901760, %v5779_v55 }
  0x8f   : > { %4116 = vmatprep.subr.mxu1 %v1412_v56  ;;  %8122 = vst [vmem:[#allocation18_spill] sm:$0xff] %v5938_v36  ;;  %4090 = vmatpush3.msra.mxu0 %v5693_v0  ;;  %v5949_v5 = vsub.f32 %v5833_v3, %v8124_v53  ;;  %v5951_v56 = vand.u32 4294901760, %v209_v20  ;;  %8125 = vst [vmem:[#allocation29_spill] sm:$0xff] %v5962_v9  ;;  %v8127_v53 = vand.u32 4294901760, %v5860_v63  ;;  %v5972_v0 = vand.u32 4294901760, %v225_v45  ;;  %v223_v3 = vld [vmem:[%s7722_s1 + $0x188] sm:$0xff] }
  0x90   : > { %4117 = vmatpush3.msra.mxu1 %v8123_v12  ;;  %4091 = vmatprep.subr.mxu0 %v5730_v34  ;;  %8128 = vst [vmem:[#allocation30_spill] sm:$0xff] %v5976_v25  ;;  %v1447_v29 = vand.u32 4294901760, %v5920_v6  ;;  %v8130_v34 = vand.u32 4294901760, %v5841_v33  ;;  %v8131_v55 = vand.u32 4294901760, %v5799_v41  ;;  %v5998_v6 = vand.u32 4294901760, %v208_v54 }
  0x91   : > { %4118 = vmatprep.subr.mxu1 %v8126_v23  ;;  %v5970_v12 = vsub.f32 %v5860_v63, %v8127_v53  ;;  %4092 = vmatpush3.msra.mxu0 %v5732_v17  ;;  %v1335_v23 = vand.u32 4294901760, %v5928_v35  ;;  %v8133_v63 = vand.u32 4294901760, %v5808_v19  ;;  %v1342_v17 = vand.u32 4294901760, %v5949_v5 }
  0x92   : > { %4119 = vmatpush3.msra.mxu1 %v8129_v51  ;;  %v5986_v53 = vsub.f32 %v5841_v33, %v8130_v34  ;;  %4093 = vmatprep.subr.mxu0 %v5794_v27  ;;  %v5995_v51 = vand.u32 4294901760, %v224_v38  ;;  %v6001_v34 = vsub.f32 %v226_v61, %v5904_v52  ;;  %v6008_v27 = vsub.f32 %v209_v20, %v5951_v56  ;;  %v222_v20 = vld [vmem:[%s7722_s1 + $0x180] sm:$0xff] }
  0x93   : > { %4120 = vmatprep.subr.mxu1 %v8131_v55  ;;  %4094 = vmatpush3.msra.mxu0 %v5781_v15  ;;  %v207_v55 = vld [vmem:[%s7722_s1 + $0x108] sm:$0xff]  ;;  %v6015_v35 = vsub.f32 %v307_v58, %v5962_v9  ;;  %v1454_v19 = vand.u32 4294901760, %v5970_v12  ;;  %v8134_v61 = vand.u32 4294901760, %v5909_v37  ;;  %v6029_v41 = vsub.f32 %v5863_v40, %v5976_v25 }
  0x94   : > { %8132 = vst [vmem:[#allocation31_spill] sm:$0xff] %v5995_v51  ;;  %4121 = vmatpush3.msra.mxu1 %v8133_v63  ;;  %4095 = vmatprep.subr.mxu0 %v5811_v31  ;;  %v6022_v63 = vand.u32 4294901760, %v223_v3  ;;  %v8135_v58 = vand.u32 4294901760, %v5883_v1  ;;  %v206_v31 = vld [vmem:[%s7722_s1 + $0x100] sm:$0xff]  ;;  %v6041_v15 = vsub.f32 %v225_v45, %v5972_v0  ;;  %v8137_v45 = vand.u32 4294901760, %v5960_v2 }
  0x95   : > { %4122 = vmatprep.subr.mxu1 %v1433_v30  ;;  %v1460_v5 = vsub.f32 %v5909_v37, %v8134_v61  ;;  %4096 = vmatpush3.msra.mxu0 %v5784_v24  ;;  %v1349_v30 = vand.u32 4294901760, %v5986_v53  ;;  %v6048_v53 = vsub.f32 %v208_v54, %v5998_v6  ;;  %v7847_v61 = vand.u32 4294901760, %v5938_v36 }
  0x96   : > { %4123 = vmatpush3.msra.mxu1 %v1321_v44  ;;  %v1355_v12 = vsub.f32 %v5883_v1, %v8135_v58  ;;  %4097 = vmatprep.subr.mxu0 %v5854_v60  ;;  %v8136_v44 = vand.u32 4294901760, %v5941_v62  ;;  %v6050_v58 = vand.u32 4294901760, %v207_v55  ;;  %v1474_v24 = vsub.f32 %v5960_v2, %v8137_v45 }
  0x97   : > { %4124 = vmatprep.subr.mxu1 %v1440_v13  ;;  %4098 = vmatpush3.msra.mxu0 %v5823_v32  ;;  %v6057_v60 = vand.u32 4294901760, %v222_v20  ;;  %v1461_v54 = vand.u32 4294901760, %v1460_v5  ;;  %v6064_v1 = vand.u32 4294901760, %v206_v31  ;;  %v8138_v32 = vand.u32 4294901760, %v5923_v8 }
  0x98   : > { %v1467_v40 = vsub.f32 %v5941_v62, %v8136_v44  ;;  %4125 = vmatpush3.msra.mxu1 %v1328_v4  ;;  %v6061_v44 = vsub.f32 %v224_v38, %v5995_v51  ;;  %4099 = vmatprep.subr.mxu0 %v5895_v49  ;;  %v1356_v45 = vand.u32 4294901760, %v1355_v12  ;;  %v6074_v49 = vsub.f32 %v223_v3, %v6022_v63 }
  0x99   : > { %4126 = vmatprep.subr.mxu1 %v1447_v29  ;;  %4100 = vmatpush3.msra.mxu0 %v5869_v39  ;;  %v1362_v13 = vsub.f32 %v5923_v8, %v8138_v32  ;;  %v6078_v5 = vsub.f32 %v207_v55, %v6050_v58  ;;  %v8139_v4 = vand.u32 4294901760, %v6001_v34  ;;  %v7850_v12 = vand.u32 4294901760, %v6008_v27 }
  0x9a   : > { %4127 = vmatpush3.msra.mxu1 %v1335_v23  ;;  %4101 = vmatprep.subr.mxu0 %v5904_v52  ;;  %v1468_v29 = vand.u32 4294901760, %v1467_v40  ;;  %v1475_v32 = vand.u32 4294901760, %v1474_v24  ;;  %v8140_v3 = vand.u32 4294901760, %v6015_v35  ;;  %v6090_v40 = vsub.f32 %v222_v20, %v6057_v60 }
  0x9b   : > { %4128 = vmatprep.subr.mxu1 %v1454_v19  ;;  %v1481_v23 = vsub.f32 %v6001_v34, %v8139_v4  ;;  %4102 = vmatpush3.msra.mxu0 %v5890_v7  ;;  %v6094_v55 = vsub.f32 %v206_v31, %v6064_v1  ;;  %v8143_v24 = vand.u32 4294901760, %v6029_v41  ;;  %v1363_v20 = vand.u32 4294901760, %v1362_v13 }
  0x9c   : > { %4129 = vmatpush3.msra.mxu1 %v1342_v17  ;;  %v1275_v38 = vsub.f32 %v6015_v35, %v8140_v3  ;;  %8141 = vst [vmem:[#allocation32_spill] sm:$0xff] %v6090_v40  ;;  %4103 = vmatprep.subr.mxu0 %v5972_v0  ;;  %v1369_v17 = vsub.f32 %v5938_v36, %v7847_v61  ;;  %v8144_v19 = vand.u32 4294901760, %v6041_v15  ;;  %v8145_v13 = vand.u32 4294901760, %v6061_v44 }
  0x9d   : > { %4130 = vmatprep.subr.mxu1 %v1461_v54  ;;  %8142 = vst [vmem:[#allocation33_spill] sm:$0xff] %v6094_v55  ;;  %v1281_v4 = vsub.f32 %v6029_v41, %v8143_v24  ;;  %4104 = vmatpush3.msra.mxu0 %v5951_v56  ;;  %v1482_v61 = vand.u32 4294901760, %v1481_v23  ;;  %v1376_v24 = vsub.f32 %v6008_v27, %v7850_v12  ;;  %v7852_v31 = vand.u32 4294901760, %v6090_v40 }
  0x9e   : > { %4131 = vmatpush3.msra.mxu1 %v1349_v30  ;;  %v1488_v54 = vsub.f32 %v6041_v15, %v8144_v19  ;;  %4105 = vmatprep.subr.mxu0 %v5995_v51  ;;  %v1276_v30 = vand.u32 4294901760, %v1275_v38  ;;  %v1495_v19 = vsub.f32 %v6061_v44, %v8145_v13  ;;  %v8146_v51 = vand.u32 4294901760, %v6048_v53 }
  0x9f   : > { %4132 = vmatprep.subr.mxu1 %v1468_v29  ;;  %4106 = vmatpush3.msra.mxu0 %v5998_v6  ;;  %v1370_v29 = vand.u32 4294901760, %v1369_v17  ;;  %v1282_v23 = vand.u32 4294901760, %v1281_v4  ;;  %v7851_v3 = vand.u32 4294901760, %v6094_v55  ;;  %v8147_v38 = vand.u32 4294901760, %v6074_v49 }
  0xa0   : > { %4133 = vmatpush3.msra.mxu1 %v1356_v45  ;;  %4107 = vmatprep.subr.mxu0 %v6022_v63  ;;  %v1383_v12 = vsub.f32 %v6048_v53, %v8146_v51  ;;  %v1489_v45 = vand.u32 4294901760, %v1488_v54  ;;  %v8148_v17 = vand.u32 4294901760, %v6078_v5  ;;  %v1496_v51 = vand.u32 4294901760, %v1495_v19 }
  0xa1   : > { %4134 = vmatprep.subr.mxu1 %v1475_v32  ;;  %4108 = vmatpush3.msra.mxu0 %v6050_v58  ;;  %v1502_v13 = vsub.f32 %v6074_v49, %v8147_v38  ;;  %v1377_v32 = vand.u32 4294901760, %v1376_v24  ;;  %v8152_v38 = vld [vmem:[#allocation16_spill] sm:$0xff] }
  0xa2   : > { %4135 = vmatpush3.msra.mxu1 %v1363_v20  ;;  %4109 = vmatprep.subr.mxu0 %v6057_v60  ;;  %v1390_v4 = vsub.f32 %v6078_v5, %v8148_v17  ;;  %v1509_v20 = vsub.f32 %v6090_v40, %v7852_v31  ;;  %v1384_v54 = vand.u32 4294901760, %v1383_v12  ;;  %v8155_v17 = vld [vmem:[#allocation24_spill] sm:$0xff]  ;;  %v8166_v31 = vld [vmem:[#allocation14_spill] sm:$0xff] }
  0xa3   : > { %4136 = vmatprep.subr.mxu1 %v1482_v61  ;;  %4110 = vmatpush3.msra.mxu0 %v6064_v1  ;;  %v1397_v61 = vsub.f32 %v6094_v55, %v7851_v3  ;;  %v1503_v24 = vand.u32 4294901760, %v1502_v13  ;;  %v8153_v13 = vld [vmem:[#allocation6_spill] sm:$0xff]  ;;  %v8165_v3 = vld [vmem:[#allocation21_spill] sm:$0xff] }
  0xa4   : > { %1277 = vmatprep.mubr.f32.mxu0 %v1276_v30  ;;  %4137 = vmatpush3.msra.mxu1 %v1370_v29  ;;  %v1391_v30 = vand.u32 4294901760, %v1390_v4  ;;  %v1510_v19 = vand.u32 4294901760, %v1509_v20  ;;  %v8149_v29 = vld [vmem:[#allocation5_spill] sm:$0xff]  ;;  %v8156_v4 = vld [vmem:[#allocation7_spill] sm:$0xff]  ;;  %v8158_v20 = vld [vmem:[#allocation10_spill] sm:$0xff] }
  0xa5   : > { %1283 = vmatmul.mubr.f32.vlgmr.msra.gmra.mxu0 %v1282_v23  ;;  %4138 = vmatprep.subr.mxu1 %v1489_v45  ;;  %v1398_v12 = vand.u32 4294901760, %v1397_v61  ;;  %v8150_v23 = vld [vmem:[#allocation19_spill] sm:$0xff]  ;;  %v8151_v45 = vld [vmem:[#allocation22_spill] sm:$0xff]  ;;  %v8160_v61 = vld [vmem:[#allocation9_spill] sm:$0xff] }
  0xa6   : > { %4149 = vmatprep.subr.mxu0 %v5624_v47  ;;  %4139 = vmatpush3.msra.mxu1 %v1377_v32  ;;  %v8154_v32 = vld [vmem:[#allocation25_spill] sm:$0xff] }
  0xa7   : > { %4150 = vmatpush3.msra.mxu0 %v5605_v22  ;;  %4140 = vmatprep.subr.mxu1 %v1496_v51  ;;  %v8157_v51 = vld [vmem:[#allocation8_spill] sm:$0xff] }
  0xa8   : > { %4151 = vmatprep.subr.mxu0 %v5649_v26  ;;  %4141 = vmatpush3.msra.mxu1 %v1384_v54  ;;  %v8159_v54 = vld [vmem:[#allocation27_spill] sm:$0xff] }
  0xa9   : > { %4152 = vmatpush3.msra.mxu0 %v5616_v46  ;;  %4142 = vmatprep.subr.mxu1 %v1503_v24  ;;  %v8161_v24 = vld [vmem:[#allocation11_spill] sm:$0xff] }
  0xaa   : > { %4153 = vmatprep.subr.mxu0 %v5660_v14  ;;  %4143 = vmatpush3.msra.mxu1 %v1391_v30  ;;  %v8162_v30 = vld [vmem:[#allocation12_spill] sm:$0xff] }
  0xab   : > { %4154 = vmatpush3.msra.mxu0 %v5666_v57  ;;  %4144 = vmatprep.subr.mxu1 %v1510_v19  ;;  %v8163_v19 = vld [vmem:[#allocation20_spill] sm:$0xff] }
  0xac   : > { %4155 = vmatprep.subr.mxu0 %v5679_v50  ;;  %4145 = vmatpush3.msra.mxu1 %v1398_v12  ;;  %v8164_v12 = vld [vmem:[#allocation13_spill] sm:$0xff] }
  0xad   : > { %1513 = vmatprep.mubr.f32.mxu1 %v5962_v9  ;;  %4156 = vmatpush3.msra.mxu0 %v5685_v59  ;;  %v8168_v9 = vld [vmem:[#allocation23_spill] sm:$0xff] }
  0xae   : > { %1515 = vmatmul.mubr.f32.vlgmr.msra.gmra.mxu1 %v5976_v25  ;;  %4157 = vmatprep.subr.mxu0 %v5722_v11  ;;  %v8167_v25 = vld [vmem:[#allocation15_spill] sm:$0xff] }
  0xaf   : > { %4184 = vmatprep.subr.mxu1 %v5582_v48  ;;  %4158 = vmatpush3.msra.mxu0 %v5728_v16 }
  0xb0   : > { %4185 = vmatpush3.msra.mxu1 %v5577_v42  ;;  %4159 = vmatprep.subr.mxu0 %v5772_v10 }
  0xb1   : > { %4186 = vmatprep.subr.mxu1 %v5607_v28  ;;  %4160 = vmatpush3.msra.mxu0 %v5751_v18 }
  0xb2   : > { %4187 = vmatpush3.msra.mxu1 %v5587_v21  ;;  %4161 = vmatprep.subr.mxu0 %v5817_v43 }
  0xb3   : > { %4188 = vmatprep.subr.mxu1 %v8149_v29  ;;  %4162 = vmatpush3.msra.mxu0 %v8150_v23 }
  0xb4   : > { %4189 = vmatpush3.msra.mxu1 %v8151_v45  ;;  %4163 = vmatprep.subr.mxu0 %v8152_v38 }
  0xb5   : > { %4190 = vmatprep.subr.mxu1 %v8153_v13  ;;  %4164 = vmatpush3.msra.mxu0 %v8154_v32 }
  0xb6   : > { %4191 = vmatpush3.msra.mxu1 %v8155_v17  ;;  %4165 = vmatprep.subr.mxu0 %v5909_v37 }
  0xb7   : > { %4192 = vmatprep.subr.mxu1 %v8156_v4  ;;  %4166 = vmatpush3.msra.mxu0 %v5841_v33 }
  0xb8   : > { %4193 = vmatpush3.msra.mxu1 %v8157_v51  ;;  %4167 = vmatprep.subr.mxu0 %v5941_v62 }
  0xb9   : > { %4194 = vmatprep.subr.mxu1 %v8158_v20  ;;  %4168 = vmatpush3.msra.mxu0 %v8159_v54 }
  0xba   : > { %4195 = vmatpush3.msra.mxu1 %v8160_v61  ;;  %4169 = vmatprep.subr.mxu0 %v5960_v2 }
  0xbb   : > { %4196 = vmatprep.subr.mxu1 %v8161_v24  ;;  %4170 = vmatpush3.msra.mxu0 %v5923_v8 }
  0xbc   : > { %4197 = vmatpush3.msra.mxu1 %v8162_v30  ;;  %4171 = vmatprep.subr.mxu0 %v6001_v34 }
  0xbd   : > { %4198 = vmatprep.subr.mxu1 %v8163_v19  ;;  %4172 = vmatpush3.msra.mxu0 %v5938_v36  ;;  %v8169_v36 = vld [vmem:[#allocation26_spill] sm:$0xff] }
  0xbe   : > { %4199 = vmatpush3.msra.mxu1 %v8164_v12  ;;  %4173 = vmatprep.subr.mxu0 %v6041_v15 }
  0xbf   : > { %4200 = vmatprep.subr.mxu1 %v8165_v3  ;;  %4174 = vmatpush3.msra.mxu0 %v6008_v27 }
  0xc0   : > { %4201 = vmatpush3.msra.mxu1 %v8166_v31  ;;  %4175 = vmatprep.subr.mxu0 %v6061_v44 }
  0xc1   : > { %4202 = vmatprep.subr.mxu1 %v8167_v25  ;;  %4176 = vmatpush3.msra.mxu0 %v6048_v53 }
  0xc2   : > { %4203 = vmatpush3.msra.mxu1 %v8168_v9  ;;  %4177 = vmatprep.subr.mxu0 %v6074_v49 }
  0xc3   : > { %4204 = vmatprep.subr.mxu1 %v8169_v36  ;;  %4178 = vmatpush3.msra.mxu0 %v6078_v5  ;;  %v8170_v36 = vand.u32 4294901760, %v5624_v47  ;;  %v8175_v47 = vand.u32 4294901760, %v5660_v14  ;;  %v8180_v14 = vand.u32 4294901760, %v6029_v41 }
  0xc4   : > { %4205 = vmatpush3.msra.mxu1 %v5869_v39  ;;  %4179 = vmatprep.subr.mxu0 %v6090_v40  ;;  %v8171_v39 = vand.u32 4294901760, %v5605_v22  ;;  %v8172_v40 = vld [vmem:[#allocation31_spill] sm:$0xff]  ;;  %v8176_v22 = vand.u32 4294901760, %v5666_v57  ;;  %v8182_v57 = vand.u32 4294901760, %v5728_v16 }
  0xc5   : > { %4206 = vmatprep.subr.mxu1 %v5904_v52  ;;  %4180 = vmatpush3.msra.mxu0 %v6094_v55  ;;  %v8173_v55 = vand.u32 4294901760, %v5649_v26  ;;  %v8177_v26 = vand.u32 4294901760, %v5679_v50  ;;  %v8183_v50 = vand.u32 4294901760, %v5772_v10  ;;  %v269_v16 = vld [vmem:[%s7722_s1 + $0x2f8] sm:$0xff]  ;;  %v8189_v10 = vand.u32 4294901760, %v5909_v37  ;;  %v251_v37 = vld [vmem:[%s7722_s1 + $0x268] sm:$0xff] }
  0xc6   : > { %1650 = vmatprep.mubr.f32.mxu0 %v6015_v35  ;;  %4207 = vmatpush3.msra.mxu1 %v5890_v7  ;;  %v8174_v7 = vand.u32 4294901760, %v5616_v46  ;;  %v8178_v46 = vand.u32 4294901760, %v6015_v35 }
  0xc7   : > { %1653 = vmatmul.mubr.f32.vlgmr.msra.gmra.mxu0 %v6029_v41  ;;  %4208 = vmatprep.subr.mxu1 %v5972_v0  ;;  %v267_v41 = vld [vmem:[%s7722_s1 + $0x2e8] sm:$0xff] }
  0xc8   : > { %4219 = vmatprep.subr.mxu0 %v8170_v36  ;;  %4209 = vmatpush3.msra.mxu1 %v5951_v56 }
  0xc9   : > { %4220 = vmatpush3.msra.mxu0 %v8171_v39  ;;  %4210 = vmatprep.subr.mxu1 %v8172_v40  ;;  %v8181_v39 = vand.u32 4294901760, %v5722_v11  ;;  %v8185_v11 = vand.u32 4294901760, %v5817_v43  ;;  %v8188_v43 = vand.u32 4294901760, %v8154_v32  ;;  %v8194_v32 = vand.u32 4294901760, %v5960_v2 }
  0xca   : > { %4221 = vmatprep.subr.mxu0 %v8173_v55  ;;  %4211 = vmatpush3.msra.mxu1 %v5998_v6  ;;  %v8190_v55 = vand.u32 4294901760, %v5841_v33  ;;  %v266_v33 = vld [vmem:[%s7722_s1 + $0x2e0] sm:$0xff]  ;;  %v8198_v2 = vand.u32 4294901760, %v6001_v34  ;;  %v265_v34 = vld [vmem:[%s7722_s1 + $0x2d8] sm:$0xff] }
  0xcb   : > { %4222 = vmatpush3.msra.mxu0 %v8174_v7  ;;  %4212 = vmatprep.subr.mxu1 %v6022_v63  ;;  %v8179_v7 = vand.u32 4294901760, %v5685_v59  ;;  %v8184_v59 = vand.u32 4294901760, %v5751_v18  ;;  %v268_v18 = vld [vmem:[%s7722_s1 + $0x2f0] sm:$0xff] }
  0xcc   : > { %4223 = vmatprep.subr.mxu0 %v8175_v47  ;;  %4213 = vmatpush3.msra.mxu1 %v6050_v58  ;;  %v249_v47 = vld [vmem:[%s7722_s1 + $0x258] sm:$0xff] }
  0xcd   : > { %4224 = vmatpush3.msra.mxu0 %v8176_v22  ;;  %4214 = vmatprep.subr.mxu1 %v6057_v60 }
  0xce   : > { %4225 = vmatprep.subr.mxu0 %v8177_v26  ;;  %4215 = vmatpush3.msra.mxu1 %v6064_v1  ;;  %v8202_v26 = vand.u32 4294901760, %v6041_v15  ;;  %v6349_v15 = vand.u32 4294901760, %v249_v47 }
  0xcf   : > { %1757 = vmatprep.mubr.f32.mxu1 %v8178_v46  ;;  %4226 = vmatpush3.msra.mxu0 %v8179_v7 }
  0xd0   : > { %1761 = vmatmul.mubr.f32.vlgmr.msra.gmra.mxu1 %v8180_v14  ;;  %4227 = vmatprep.subr.mxu0 %v8181_v39  ;;  %v8203_v39 = vand.u32 4294901760, %v6008_v27  ;;  %8204 = vst [vmem:[#allocation6_spill] sm:$0xff] %v6349_v15  ;;  %v6363_v27 = vand.u32 4294901760, %v265_v34 }
  0xd1   : > { %4254 = vmatprep.subr.mxu1 %v5582_v48  ;;  %4228 = vmatpush3.msra.mxu0 %v8182_v57  ;;  %v8186_v48 = vand.u32 4294901760, %v8150_v23  ;;  %v6281_v23 = vand.u32 4294901760, %v269_v16 }
  0xd2   : > { %4255 = vmatpush3.msra.mxu1 %v5577_v42  ;;  %4229 = vmatprep.subr.mxu0 %v8183_v50  ;;  %v253_v42 = vld [vmem:[%s7722_s1 + $0x278] sm:$0xff]  ;;  %v8205_v50 = vand.u32 4294901760, %v6061_v44  ;;  %8206 = vst [vmem:[#allocation25_spill] sm:$0xff] %v6363_v27 }
  0xd3   : > { %4256 = vmatprep.subr.mxu1 %v5607_v28  ;;  %4230 = vmatpush3.msra.mxu0 %v8184_v59  ;;  %v252_v28 = vld [vmem:[%s7722_s1 + $0x270] sm:$0xff]  ;;  %v6265_v36 = vand.u32 4294901760, %v253_v42 }
  0xd4   : > { %4257 = vmatpush3.msra.mxu1 %v5587_v21  ;;  %4231 = vmatprep.subr.mxu0 %v8185_v11  ;;  %v8187_v21 = vand.u32 4294901760, %v8152_v38  ;;  %v6267_v35 = vand.u32 4294901760, %v252_v28  ;;  %v8192_v38 = vand.u32 4294901760, %v8159_v54  ;;  %v6310_v54 = vand.u32 4294901760, %v266_v33 }
  0xd5   : > { %4258 = vmatprep.subr.mxu1 %v8149_v29  ;;  %4232 = vmatpush3.msra.mxu0 %v8186_v48  ;;  %v8191_v29 = vand.u32 4294901760, %v5941_v62  ;;  %v250_v62 = vld [vmem:[%s7722_s1 + $0x260] sm:$0xff]  ;;  %v8207_v48 = vand.u32 4294901760, %v6048_v53  ;;  %v263_v53 = vld [vmem:[%s7722_s1 + $0x2c8] sm:$0xff] }
  0xd6   : > { %4259 = vmatpush3.msra.mxu1 %v8151_v45  ;;  %4233 = vmatprep.subr.mxu0 %v8187_v21  ;;  %v6283_v45 = vand.u32 4294901760, %v268_v18  ;;  %8197 = vst [vmem:[#allocation22_spill] sm:$0xff] %v6310_v54  ;;  %v6355_v57 = vsub.f32 %v266_v33, %v6310_v54 }
  0xd7   : > { %4260 = vmatprep.subr.mxu1 %v8153_v13  ;;  %4234 = vmatpush3.msra.mxu0 %v8188_v43  ;;  %v6291_v13 = vand.u32 4294901760, %v267_v41 }
  0xd8   : > { %4261 = vmatpush3.msra.mxu1 %v8155_v17  ;;  %4235 = vmatprep.subr.mxu0 %v8189_v10  ;;  %v6300_v17 = vsub.f32 %v253_v42, %v6265_v36  ;;  %v8213_v10 = vld [vmem:[#allocation28_spill] sm:$0xff] }
  0xd9   : > { %4262 = vmatprep.subr.mxu1 %v8156_v4  ;;  %4236 = vmatpush3.msra.mxu0 %v8190_v55  ;;  %8193 = vst [vmem:[#allocation5_spill] sm:$0xff] %v6291_v13  ;;  %v6303_v4 = vsub.f32 %v252_v28, %v6267_v35  ;;  %v8210_v28 = vld [vmem:[#allocation26_spill] sm:$0xff]  ;;  %v7862_v55 = vand.u32 4294901760, %v6355_v57 }
  0xda   : > { %4263 = vmatpush3.msra.mxu1 %v8157_v51  ;;  %4237 = vmatprep.subr.mxu0 %v8191_v29  ;;  %v6305_v51 = vand.u32 4294901760, %v251_v37  ;;  %v7868_v7 = vand.u32 4294901760, %v6300_v17 }
  0xdb   : > { %4264 = vmatprep.subr.mxu1 %v8158_v20  ;;  %4238 = vmatpush3.msra.mxu0 %v8192_v38  ;;  %v8196_v20 = vand.u32 4294901760, %v5923_v8  ;;  %v6324_v8 = vsub.f32 %v268_v18, %v6283_v45  ;;  %v7866_v14 = vand.u32 4294901760, %v6303_v4  ;;  %v8212_v18 = vand.u32 4294901760, %v6078_v5  ;;  %v262_v38 = vld [vmem:[%s7722_s1 + $0x2c0] sm:$0xff] }
  0xdc   : > { %4265 = vmatpush3.msra.mxu1 %v8160_v61  ;;  %4239 = vmatprep.subr.mxu0 %v8194_v32  ;;  %8195 = vst [vmem:[#allocation19_spill] sm:$0xff] %v6305_v51  ;;  %v6315_v61 = vand.u32 4294901760, %v250_v62  ;;  %v6339_v46 = vsub.f32 %v251_v37, %v6305_v51  ;;  %v6379_v21 = vsub.f32 %v6300_v17, %v7868_v7  ;;  %v8214_v37 = vld [vmem:[#allocation32_spill] sm:$0xff] }
  0xdd   : > { %4266 = vmatprep.subr.mxu1 %v8161_v24  ;;  %4240 = vmatpush3.msra.mxu0 %v8196_v20  ;;  %v6318_v24 = vsub.f32 %v269_v16, %v6281_v23  ;;  %v7867_v11 = vand.u32 4294901760, %v6324_v8  ;;  %v8215_v29 = vand.u32 4294901760, %v8214_v37  ;;  %v6423_v32 = vsub.f32 %v265_v34, %v6363_v27  ;;  %v8216_v20 = vld [vmem:[#allocation33_spill] sm:$0xff]  ;;  %v8222_v34 = vld [vmem:[#allocation30_spill] sm:$0xff] }
  0xde   : > { %4267 = vmatpush3.msra.mxu1 %v8162_v30  ;;  %4241 = vmatprep.subr.mxu0 %v8198_v2  ;;  %8199 = vst [vmem:[#allocation16_spill] sm:$0xff] %v6315_v61  ;;  %v8200_v30 = vld [vmem:[#allocation18_spill] sm:$0xff]  ;;  %v6361_v59 = vsub.f32 %v250_v62, %v6315_v61  ;;  %v7863_v16 = vand.u32 4294901760, %v6339_v46  ;;  %v246_v62 = vld [vmem:[%s7722_s1 + $0x240] sm:$0xff]  ;;  %v8217_v2 = vand.u32 4294901760, %v8216_v20 }
  0xdf   : > { %4268 = vmatprep.subr.mxu1 %v8163_v19  ;;  %v8201_v22 = vand.u32 4294901760, %v8200_v30  ;;  %v6333_v19 = vsub.f32 %v267_v41, %v6291_v13  ;;  %v6399_v41 = vsub.f32 %v249_v47, %v6349_v15  ;;  %v6413_v5 = vsub.f32 %v6324_v8, %v7867_v11  ;;  %v8218_v47 = vld [vmem:[#allocation29_spill] sm:$0xff] }
  0xe0   : > { %4269 = vmatpush3.msra.mxu1 %v8164_v12  ;;  %v248_v12 = vld [vmem:[%s7722_s1 + $0x250] sm:$0xff]  ;;  %1927 = vmatprep.mubr.f32.mxu0 %v8218_v47  ;;  %v6461_v37 = vand.u32 4294901760, %v246_v62 }
  0xe1   : > { %4242 = vmatpush3.msra.mxu0 %v8201_v22  ;;  %4270 = vmatprep.subr.mxu1 %v8165_v3  ;;  %v264_v3 = vld [vmem:[%s7722_s1 + $0x2d0] sm:$0xff]  ;;  %v6370_v42 = vand.u32 4294901760, %v248_v12  ;;  %v7865_v44 = vand.u32 4294901760, %v6333_v19  ;;  %v6431_v22 = vand.u32 4294901760, %v263_v53 }
  0xe2   : > { %4243 = vmatprep.subr.mxu0 %v8202_v26  ;;  %4271 = vmatpush3.msra.mxu1 %v8166_v31  ;;  %v7869_v31 = vand.u32 4294901760, %v6318_v24  ;;  %v6381_v43 = vand.u32 4294901760, %v264_v3  ;;  %8224 = vst [vmem:[#allocation9_spill] sm:$0xff] %v6461_v37 }
  0xe3   : > { %4244 = vmatpush3.msra.mxu0 %v8203_v39  ;;  %4272 = vmatprep.subr.mxu1 %v8167_v25  ;;  %8208 = vst [vmem:[#allocation24_spill] sm:$0xff] %v6370_v42  ;;  %v8209_v25 = vand.u32 4294901760, %v6074_v49  ;;  %v247_v49 = vld [vmem:[%s7722_s1 + $0x248] sm:$0xff]  ;;  %v6429_v30 = vsub.f32 %v248_v12, %v6370_v42  ;;  %8219 = vst [vmem:[#allocation8_spill] sm:$0xff] %v6431_v22  ;;  %v6436_v26 = vsub.f32 %v6333_v19, %v7865_v44 }
  0xe4   : > { %4245 = vmatprep.subr.mxu0 %v8205_v50  ;;  %4273 = vmatpush3.msra.mxu1 %v8168_v9  ;;  %8211 = vst [vmem:[#allocation7_spill] sm:$0xff] %v6381_v43  ;;  %v6386_v9 = vsub.f32 %v6303_v4, %v7866_v14  ;;  %v6408_v33 = vsub.f32 %v6318_v24, %v7869_v31  ;;  %v6438_v39 = vand.u32 4294901760, %v247_v49  ;;  %v8221_v50 = vld [vmem:[#allocation17_spill] sm:$0xff] }
  0xe5   : > { %4246 = vmatpush3.msra.mxu0 %v8207_v48  ;;  %4274 = vmatprep.subr.mxu1 %v8210_v28  ;;  %v6447_v12 = vsub.f32 %v6339_v46, %v7863_v16  ;;  %v6450_v28 = vsub.f32 %v264_v3, %v6381_v43  ;;  %v245_v3 = vld [vmem:[%s7722_s1 + $0x238] sm:$0xff]  ;;  %v7872_v44 = vand.u32 4294901760, %v6429_v30  ;;  %v243_v31 = vld [vmem:[%s7722_s1 + $0x228] sm:$0xff] }
  0xe6   : > { %4247 = vmatprep.subr.mxu0 %v8209_v25  ;;  %4275 = vmatpush3.msra.mxu1 %v8213_v10  ;;  %8220 = vst [vmem:[#allocation10_spill] sm:$0xff] %v6438_v39  ;;  %v6459_v10 = vsub.f32 %v6355_v57, %v7862_v55  ;;  %v2267_v20 = vand.u32 4294901760, %v6408_v33  ;;  %v7871_v55 = vand.u32 4294901760, %v6423_v32  ;;  %v6489_v33 = vld [vmem:[%s7722_s1 + $0x2b0] sm:$0xff]  ;;  %v6503_v11 = vand.u32 4294901760, %v245_v3  ;;  %v242_v25 = vld [vmem:[%s7722_s1 + $0x220] sm:$0xff] }
  0xe7   : > { %4248 = vmatpush3.msra.mxu0 %v8212_v18  ;;  %4276 = vmatprep.subr.mxu1 %v5904_v52  ;;  %v7864_v52 = vand.u32 4294901760, %v6361_v59  ;;  %v6454_v18 = vand.u32 4294901760, %v262_v38  ;;  %v7877_v7 = vand.u32 4294901760, %v6450_v28 }
  0xe8   : > { %4249 = vmatprep.subr.mxu0 %v8215_v29  ;;  %4277 = vmatpush3.msra.mxu1 %v8221_v50  ;;  %v261_v29 = vld [vmem:[%s7722_s1 + $0x2b8] sm:$0xff]  ;;  %8227 = vst [vmem:[#allocation20_spill] sm:$0xff] %v6503_v11 }
  0xe9   : > { %4250 = vmatpush3.msra.mxu0 %v8217_v2  ;;  %4278 = vmatprep.subr.mxu1 %v5972_v0  ;;  %8223 = vst [vmem:[#allocation27_spill] sm:$0xff] %v6454_v18  ;;  %v7870_v0 = vand.u32 4294901760, %v6399_v41  ;;  %v6477_v50 = vsub.f32 %v6361_v59, %v7864_v52  ;;  %v244_v52 = vld [vmem:[%s7722_s1 + $0x230] sm:$0xff]  ;;  %v6501_v14 = vand.u32 4294901760, %v261_v29  ;;  %v6521_v16 = vsub.f32 %v262_v38, %v6454_v18 }
  0xea   : > { %1929 = vmatmul.mubr.f32.vlgmr.msra.gmra.mxu0 %v8222_v34  ;;  %4289 = vmatprep.subr.mxu0 %v6281_v23  ;;  %v6537_v38 = vand.u32 4294901760, %v244_v52  ;;  %v6553_v2 = vand.u32 4294901760, %v243_v31 }
  0xeb   : > { %4279 = vmatpush3.msra.mxu1 %v5951_v56  ;;  %4290 = vmatpush3.msra.mxu0 %v6265_v36  ;;  %v6484_v56 = vsub.f32 %v247_v49, %v6438_v39  ;;  %8226 = vst [vmem:[#allocation12_spill] sm:$0xff] %v6501_v14  ;;  %v6518_v49 = vsub.f32 %v6399_v41, %v7870_v0  ;;  %8229 = vst [vmem:[#allocation21_spill] sm:$0xff] %v6521_v16  ;;  %v6535_v0 = vand.u32 4294901760, %v6489_v33 }
  0xec   : > { %4280 = vmatprep.subr.mxu1 %v8172_v40  ;;  %4291 = vmatprep.subr.mxu0 %v6283_v45  ;;  %v6496_v40 = vsub.f32 %v263_v53, %v6431_v22  ;;  %v6513_v53 = vsub.f32 %v246_v62, %v6461_v37  ;;  %v6532_v62 = vsub.f32 %v6423_v32, %v7871_v55  ;;  %v259_v55 = vld [vmem:[%s7722_s1 + $0x2a8] sm:$0xff] }
  0xed   : > { %8225 = vst [vmem:[#allocation11_spill] sm:$0xff] %v6484_v56  ;;  %4281 = vmatpush3.msra.mxu1 %v5998_v6  ;;  %4292 = vmatpush3.msra.mxu0 %v6267_v35  ;;  %8230 = vst [vmem:[#allocation14_spill] sm:$0xff] %v6535_v0  ;;  %v6540_v6 = vld [vmem:[%s5302_s7 + $0x10] sm:$0xff]  ;;  %v6572_v48 = vsub.f32 %v261_v29, %v6501_v14  ;;  %v6584_v29 = vsub.f32 %v244_v52, %v6537_v38 }
  0xee   : > { %4282 = vmatprep.subr.mxu1 %v6022_v63  ;;  %4293 = vmatprep.subr.mxu0 %v6291_v13  ;;  %8228 = vst [vmem:[#allocation13_spill] sm:$0xff] %v6513_v53  ;;  %8231 = vst [vmem:[#allocation15_spill] sm:$0xff] %v6537_v38  ;;  %v6569_v63 = vand.u32 4294901760, %v242_v25 }
  0xef   : > { %4283 = vmatpush3.msra.mxu1 %v6050_v58  ;;  %4294 = vmatpush3.msra.mxu0 %v6305_v51  ;;  %v6547_v58 = vsub.f32 %v6429_v30, %v7872_v44  ;;  %8232 = vst [vmem:[#allocation23_spill] sm:$0xff] %v6553_v2  ;;  %v6562_v44 = vsub.f32 %v245_v3, %v6503_v11  ;;  %8234 = vst [vmem:[#allocation18_spill] sm:$0xff] %v6584_v29  ;;  %v8236_v3 = vand.u32 4294901760, %v6379_v21  ;;  %v240_v21 = vld [vmem:[%s7722_s1 + $0x210] sm:$0xff] }
  0xf0   : > { %4284 = vmatprep.subr.mxu1 %v6057_v60  ;;  %4295 = vmatprep.subr.mxu0 %v6310_v54  ;;  %v258_v60 = vld [vmem:[%s7722_s1 + $0x2a0] sm:$0xff]  ;;  %v6567_v54 = vsub.f32 %v6450_v28, %v7877_v7  ;;  %8233 = vst [vmem:[#allocation31_spill] sm:$0xff] %v6569_v63  ;;  %v308_v51 = vcombine.high %v6540_v6, %v6540_v6  ;;  %v2295_v7 = vand.u32 4294901760, %v6532_v62  ;;  %v8237_v62 = vand.u32 4294901760, %v6496_v40 }
  0xf1   : > { %4285 = vmatpush3.msra.mxu1 %v6064_v1  ;;  %2031 = vmatprep.mubr.f32.mxu1 %v8218_v47  ;;  %v241_v1 = vld [vmem:[%s7722_s1 + $0x218] sm:$0xff]  ;;  %v6603_v47 = vsub.f32 %v243_v31, %v6553_v2 }
  0xf2   : > { %4296 = vmatpush3.msra.mxu0 %v6315_v61  ;;  %2033 = vmatmul.mubr.f32.vlgmr.msra.gmra.mxu1 %v8222_v34  ;;  %v6586_v61 = vand.u32 4294901760, %v259_v55  ;;  %v6588_v34 = vand.u32 4294901760, %v258_v60  ;;  %v6600_v52 = vsub.f32 %v6496_v40, %v8237_v62  ;;  %v2302_v62 = vand.u32 4294901760, %v6567_v54  ;;  %v257_v31 = vld [vmem:[%s7722_s1 + $0x298] sm:$0xff] }
  0xf3   : > { %4297 = vmatprep.subr.mxu0 %v6363_v27  ;;  %4324 = vmatprep.subr.mxu1 %v2267_v20  ;;  %v8238_v27 = vand.u32 4294901760, %v6484_v56  ;;  %v6618_v20 = vsub.f32 %v242_v25, %v6569_v63  ;;  %v8242_v54 = vand.u32 4294901760, %v6521_v16 }
  0xf4   : > { %8235 = vst [vmem:[#allocation26_spill] sm:$0xff] %v6586_v61  ;;  %4298 = vmatpush3.msra.mxu0 %v6349_v15  ;;  %4325 = vmatpush3.msra.mxu1 %v8236_v3  ;;  %v8239_v3 = vand.u32 4294901760, %v6413_v5  ;;  %v6626_v15 = vsub.f32 %v6489_v33, %v6535_v0  ;;  %v8241_v5 = vand.u32 4294901760, %v6386_v9  ;;  %v256_v33 = vld [vmem:[%s7722_s1 + $0x290] sm:$0xff]  ;;  %v8245_v9 = vand.u32 4294901760, %v6436_v26 }
  0xf5   : > { %v6608_v13 = vsub.f32 %v6484_v56, %v8238_v27  ;;  %4299 = vmatprep.subr.mxu0 %v6381_v43  ;;  %8240 = vst [vmem:[#allocation28_spill] sm:$0xff] %v6618_v20  ;;  %v6634_v25 = vsub.f32 %v6521_v16, %v8242_v54  ;;  %v6641_v27 = vand.u32 4294901760, %v241_v1  ;;  %v6652_v54 = vand.u32 4294901760, %v240_v21 }
  0xf6   : > { %4326 = vmatprep.subr.mxu1 %v8239_v3  ;;  %4300 = vmatpush3.msra.mxu0 %v6370_v42  ;;  %v8243_v3 = vand.u32 4294901760, %v6513_v53  ;;  %v6646_v42 = vand.u32 4294901760, %v308_v51  ;;  %v8247_v16 = vand.u32 4294901760, %v6447_v12  ;;  %v8249_v56 = vand.u32 4294901760, %v6572_v48 }
  0xf7   : > { %4327 = vmatpush3.msra.mxu1 %v8241_v5  ;;  %4301 = vmatprep.subr.mxu0 %v6431_v22  ;;  %v2309_v22 = vand.u32 4294901760, %v6600_v52  ;;  %v2197_v26 = vand.u32 4294901760, %v6608_v13  ;;  %v6676_v12 = vand.u32 4294901760, %v256_v33  ;;  %v255_v13 = vld [vmem:[%s7722_s1 + $0x288] sm:$0xff]  ;;  %v6683_v52 = vsub.f32 %v258_v60, %v6588_v34 }
  0xf8   : > { %v6639_v43 = vsub.f32 %v6513_v53, %v8243_v3  ;;  %8244 = vst [vmem:[#allocation32_spill] sm:$0xff] %v6646_v42  ;;  %4328 = vmatprep.subr.mxu1 %v8245_v9  ;;  %v6655_v3 = vsub.f32 %v259_v55, %v6586_v61  ;;  %v6658_v53 = vand.u32 4294901760, %v6540_v6  ;;  %4302 = vmatpush3.msra.mxu0 %v6438_v39  ;;  %v6665_v9 = vand.u32 4294901760, %v257_v31 }
  0xf9   : > { %4329 = vmatpush3.msra.mxu1 %v8247_v16  ;;  %4303 = vmatprep.subr.mxu0 %v6454_v18  ;;  %v8248_v55 = vand.u32 4294901760, %v6459_v10  ;;  %v6674_v39 = vsub.f32 %v6572_v48, %v8249_v56  ;;  %8250 = vst [vmem:[#allocation29_spill] sm:$0xff] %v6676_v12  ;;  %v8251_v10 = vand.u32 4294901760, %v6477_v50  ;;  %v6691_v5 = vsub.f32 %v241_v1, %v6641_v27  ;;  %v239_v16 = vld [vmem:[%s7722_s1 + $0x208] sm:$0xff]  ;;  %v254_v1 = vld [vmem:[%s7722_s1 + $0x280] sm:$0xff] }
  0xfa   : > { %8246 = vst [vmem:[#allocation33_spill] sm:$0xff] %v6658_v53  ;;  %4304 = vmatpush3.msra.mxu0 %v6461_v37  ;;  %v2204_v56 = vand.u32 4294901760, %v6639_v43  ;;  %v6697_v18 = vsub.f32 %v308_v51, %v6646_v42  ;;  %v8252_v50 = vand.u32 4294901760, %v6562_v44  ;;  %v238_v51 = vld [vmem:[%s7722_s1 + $0x200] sm:$0xff]  ;;  %v6723_v43 = vand.u32 4294901760, %v255_v13  ;;  %2375 = vmatprep.mubr.f32.mxu1 %v6646_v42  ;;  %v8289_v42 = vld [vmem:[#allocation15_spill] sm:$0xff] }
  0xfb   : > { %4330 = vmatprep.subr.mxu1 %v8248_v55  ;;  %v2316_v55 = vand.u32 4294901760, %v6634_v25  ;;  %4305 = vmatprep.subr.mxu0 %v6501_v14  ;;  %v6704_v25 = vsub.f32 %v240_v21, %v6652_v54  ;;  %v8254_v21 = vand.u32 4294901760, %v6584_v29  ;;  %v6727_v37 = vsub.f32 %v257_v31, %v6665_v9 }
  0xfc   : > { %4331 = vmatpush3.msra.mxu1 %v8251_v10  ;;  %v2210_v60 = vsub.f32 %v6562_v44, %v8252_v50  ;;  %4306 = vmatpush3.msra.mxu0 %v6503_v11  ;;  %v8253_v10 = vand.u32 4294901760, %v6518_v49  ;;  %v8255_v11 = vand.u32 4294901760, %v6626_v15  ;;  %v8256_v14 = vand.u32 4294901760, %v6547_v58 }
  0xfd   : > { %4332 = vmatprep.subr.mxu1 %v2295_v7  ;;  %v6715_v7 = vsub.f32 %v6540_v6, %v6658_v53  ;;  %v2217_v50 = vsub.f32 %v6584_v29, %v8254_v21  ;;  %4307 = vmatprep.subr.mxu0 %v6535_v0  ;;  %v2323_v6 = vand.u32 4294901760, %v6674_v39  ;;  %v6740_v31 = vand.u32 4294901760, %v254_v1 }
  0xfe   : > { %4333 = vmatpush3.msra.mxu1 %v8253_v10  ;;  %v2329_v49 = vsub.f32 %v6626_v15, %v8255_v11  ;;  %v6734_v10 = vand.u32 4294901760, %v239_v16  ;;  %4308 = vmatpush3.msra.mxu0 %v6537_v38  ;;  %v6742_v29 = vand.u32 4294901760, %v238_v51  ;;  %v6746_v39 = vsub.f32 %v256_v33, %v6676_v12 }
  0xff   : > { %4334 = vmatprep.subr.mxu1 %v2302_v62  ;;  %4309 = vmatprep.subr.mxu0 %v6586_v61  ;;  %v2211_v11 = vand.u32 4294901760, %v2210_v60  ;;  %v8257_v21 = vand.u32 4294901760, %v6655_v3  ;;  %v7916_v58 = vand.u32 4294901760, %v6618_v20  ;;  %v2218_v0 = vand.u32 4294901760, %v2217_v50 }
 0x100   : > { %4335 = vmatpush3.msra.mxu1 %v8256_v14  ;;  %4310 = vmatpush3.msra.mxu0 %v6553_v2  ;;  %v8258_v62 = vand.u32 4294901760, %v6603_v47  ;;  %v2330_v60 = vand.u32 4294901760, %v2329_v49  ;;  %v8259_v14 = vand.u32 4294901760, %v6683_v52 }
 0x101   : > { %4336 = vmatprep.subr.mxu1 %v2309_v22  ;;  %v2336_v38 = vsub.f32 %v6655_v3, %v8257_v21  ;;  %v6760_v22 = vsub.f32 %v255_v13, %v6723_v43  ;;  %4311 = vmatprep.subr.mxu0 %v6588_v34  ;;  %v6764_v21 = vsub.f32 %v239_v16, %v6734_v10  ;;  %v8261_v13 = vand.u32 4294901760, %v6697_v18 }
 0x102   : > { %4337 = vmatpush3.msra.mxu1 %v2197_v26  ;;  %v2224_v33 = vsub.f32 %v6603_v47, %v8258_v62  ;;  %v2343_v26 = vsub.f32 %v6683_v52, %v8259_v14  ;;  %4312 = vmatpush3.msra.mxu0 %v6569_v63  ;;  %v6772_v62 = vsub.f32 %v238_v51, %v6742_v29  ;;  %v8263_v51 = vand.u32 4294901760, %v6715_v7 }
 0x103   : > { %4338 = vmatprep.subr.mxu1 %v2316_v55  ;;  %v2137_v55 = vsub.f32 %v6697_v18, %v8261_v13  ;;  %v6779_v16 = vsub.f32 %v254_v1, %v6740_v31  ;;  %4313 = vmatprep.subr.mxu0 %v6665_v9  ;;  %v2337_v14 = vand.u32 4294901760, %v2336_v38  ;;  %v8264_v1 = vand.u32 4294901760, %v6727_v37 }
 0x104   : > { %4339 = vmatpush3.msra.mxu1 %v2204_v56  ;;  %8260 = vst [vmem:[#allocation17_spill] sm:$0xff] %v6772_v62  ;;  %v2231_v56 = vsub.f32 %v6618_v20, %v7916_v58  ;;  %v2143_v50 = vsub.f32 %v6715_v7, %v8263_v51  ;;  %4314 = vmatpush3.msra.mxu0 %v6641_v27  ;;  %v2225_v13 = vand.u32 4294901760, %v2224_v33  ;;  %v8265_v58 = vand.u32 4294901760, %v6691_v5 }
 0x105   : > { %8262 = vst [vmem:[#allocation30_spill] sm:$0xff] %v6779_v16  ;;  %4340 = vmatprep.subr.mxu1 %v2323_v6  ;;  %v2350_v49 = vsub.f32 %v6727_v37, %v8264_v1  ;;  %4315 = vmatprep.subr.mxu0 %v6676_v12  ;;  %v2344_v6 = vand.u32 4294901760, %v2343_v26  ;;  %v8266_v33 = vand.u32 4294901760, %v6746_v39  ;;  %v7920_v38 = vand.u32 4294901760, %v6779_v16 }
 0x106   : > { %4341 = vmatpush3.msra.mxu1 %v2211_v11  ;;  %v2238_v51 = vsub.f32 %v6691_v5, %v8265_v58  ;;  %4316 = vmatpush3.msra.mxu0 %v6652_v54  ;;  %v2138_v11 = vand.u32 4294901760, %v2137_v55  ;;  %v2144_v26 = vand.u32 4294901760, %v2143_v50  ;;  %v8267_v12 = vand.u32 4294901760, %v6704_v25 }
 0x107   : > { %4342 = vmatprep.subr.mxu1 %v2330_v60  ;;  %v2357_v1 = vsub.f32 %v6746_v39, %v8266_v33  ;;  %4317 = vmatprep.subr.mxu0 %v6723_v43  ;;  %v2232_v60 = vand.u32 4294901760, %v2231_v56  ;;  %v7919_v61 = vand.u32 4294901760, %v6772_v62  ;;  %v8268_v55 = vand.u32 4294901760, %v6760_v22 }
 0x108   : > { %4343 = vmatpush3.msra.mxu1 %v2218_v0  ;;  %v2245_v58 = vsub.f32 %v6704_v25, %v8267_v12  ;;  %4318 = vmatpush3.msra.mxu0 %v6734_v10  ;;  %v2351_v0 = vand.u32 4294901760, %v2350_v49  ;;  %v8269_v50 = vand.u32 4294901760, %v6764_v21  ;;  %v2371_v49 = vsub.f32 %v6779_v16, %v7920_v38  ;;  %v8287_v38 = vld [vmem:[#allocation20_spill] sm:$0xff] }
 0x109   : > { %4344 = vmatprep.subr.mxu1 %v2337_v14  ;;  %v2364_v33 = vsub.f32 %v6760_v22, %v8268_v55  ;;  %4319 = vmatprep.subr.mxu0 %v6740_v31  ;;  %v2239_v14 = vand.u32 4294901760, %v2238_v51  ;;  %v2358_v12 = vand.u32 4294901760, %v2357_v1  ;;  %v8273_v55 = vld [vmem:[#allocation21_spill] sm:$0xff] }
 0x10a   : > { %4345 = vmatpush3.msra.mxu1 %v2225_v13  ;;  %v2252_v56 = vsub.f32 %v6764_v21, %v8269_v50  ;;  %4320 = vmatpush3.msra.mxu0 %v6742_v29  ;;  %v2246_v13 = vand.u32 4294901760, %v2245_v58  ;;  %v2372_v1 = vand.u32 4294901760, %v2371_v49  ;;  %v8271_v58 = vld [vmem:[#allocation11_spill] sm:$0xff]  ;;  %v8276_v50 = vld [vmem:[#allocation16_spill] sm:$0xff] }
 0x10b   : > { %4346 = vmatprep.subr.mxu1 %v2344_v6  ;;  %2139 = vmatprep.mubr.f32.mxu0 %v2138_v11  ;;  %v2259_v6 = vsub.f32 %v6772_v62, %v7919_v61  ;;  %v2365_v51 = vand.u32 4294901760, %v2364_v33  ;;  %v8274_v33 = vld [vmem:[#allocation22_spill] sm:$0xff]  ;;  %v8279_v49 = vld [vmem:[#allocation7_spill] sm:$0xff]  ;;  %v8286_v61 = vld [vmem:[#allocation12_spill] sm:$0xff] }
 0x10c   : > { %4347 = vmatpush3.msra.mxu1 %v2232_v60  ;;  %2145 = vmatmul.mubr.f32.vlgmr.msra.gmra.mxu0 %v2144_v26  ;;  %v2253_v11 = vand.u32 4294901760, %v2252_v56  ;;  %v8270_v26 = vld [vmem:[#allocation5_spill] sm:$0xff] }
 0x10d   : > { %4348 = vmatprep.subr.mxu1 %v2351_v0  ;;  %4359 = vmatprep.subr.mxu0 %v6318_v24  ;;  %v2260_v60 = vand.u32 4294901760, %v2259_v6  ;;  %v8272_v0 = vld [vmem:[#allocation19_spill] sm:$0xff]  ;;  %v8277_v56 = vld [vmem:[#allocation25_spill] sm:$0xff]  ;;  %v8281_v6 = vld [vmem:[#allocation24_spill] sm:$0xff] }
 0x10e   : > { %4349 = vmatpush3.msra.mxu1 %v2239_v14  ;;  %4360 = vmatpush3.msra.mxu0 %v6300_v17  ;;  %v8275_v14 = vld [vmem:[#allocation13_spill] sm:$0xff] }
 0x10f   : > { %4350 = vmatprep.subr.mxu1 %v2358_v12  ;;  %4361 = vmatprep.subr.mxu0 %v6324_v8  ;;  %v8278_v12 = vld [vmem:[#allocation6_spill] sm:$0xff] }
 0x110   : > { %4351 = vmatpush3.msra.mxu1 %v2246_v13  ;;  %4362 = vmatpush3.msra.mxu0 %v6303_v4  ;;  %v8280_v13 = vld [vmem:[#allocation18_spill] sm:$0xff] }
 0x111   : > { %4352 = vmatprep.subr.mxu1 %v2365_v51  ;;  %4363 = vmatprep.subr.mxu0 %v6333_v19  ;;  %v8282_v51 = vld [vmem:[#allocation8_spill] sm:$0xff] }
 0x112   : > { %4353 = vmatpush3.msra.mxu1 %v2253_v11  ;;  %4364 = vmatpush3.msra.mxu0 %v6339_v46  ;;  %v8283_v11 = vld [vmem:[#allocation10_spill] sm:$0xff] }
 0x113   : > { %4354 = vmatprep.subr.mxu1 %v2372_v1  ;;  %4365 = vmatprep.subr.mxu0 %v6355_v57  ;;  %v8284_v1 = vld [vmem:[#allocation27_spill] sm:$0xff] }
 0x114   : > { %4355 = vmatpush3.msra.mxu1 %v2260_v60  ;;  %4366 = vmatpush3.msra.mxu0 %v6361_v59  ;;  %v8285_v60 = vld [vmem:[#allocation9_spill] sm:$0xff] }
 0x115   : > { %2377 = vmatmul.mubr.f32.vlgmr.msra.gmra.mxu1 %v6658_v53  ;;  %4367 = vmatprep.subr.mxu0 %v6423_v32  ;;  %v8288_v53 = vld [vmem:[#allocation14_spill] sm:$0xff] }
 0x116   : > { %4394 = vmatprep.subr.mxu1 %v6281_v23  ;;  %4368 = vmatpush3.msra.mxu0 %v6399_v41 }
 0x117   : > { %4395 = vmatpush3.msra.mxu1 %v6265_v36  ;;  %4369 = vmatprep.subr.mxu0 %v6450_v28 }
 0x118   : > { %4396 = vmatprep.subr.mxu1 %v6283_v45  ;;  %4370 = vmatpush3.msra.mxu0 %v6429_v30 }
 0x119   : > { %4397 = vmatpush3.msra.mxu1 %v6267_v35  ;;  %4371 = vmatprep.subr.mxu0 %v6496_v40 }
 0x11a   : > { %4398 = vmatprep.subr.mxu1 %v8270_v26  ;;  %4372 = vmatpush3.msra.mxu0 %v8271_v58 }
 0x11b   : > { %4399 = vmatpush3.msra.mxu1 %v8272_v0  ;;  %4373 = vmatprep.subr.mxu0 %v8273_v55 }
 0x11c   : > { %4400 = vmatprep.subr.mxu1 %v8274_v33  ;;  %4374 = vmatpush3.msra.mxu0 %v8275_v14 }
 0x11d   : > { %4401 = vmatpush3.msra.mxu1 %v8276_v50  ;;  %4375 = vmatprep.subr.mxu0 %v6572_v48 }
 0x11e   : > { %4402 = vmatprep.subr.mxu1 %v8277_v56  ;;  %4376 = vmatpush3.msra.mxu0 %v6562_v44 }
 0x11f   : > { %4403 = vmatpush3.msra.mxu1 %v8278_v12  ;;  %4377 = vmatprep.subr.mxu0 %v6626_v15 }
 0x120   : > { %4404 = vmatprep.subr.mxu1 %v8279_v49  ;;  %4378 = vmatpush3.msra.mxu0 %v8280_v13 }
 0x121   : > { %4405 = vmatpush3.msra.mxu1 %v8281_v6  ;;  %4379 = vmatprep.subr.mxu0 %v6655_v3 }
 0x122   : > { %4406 = vmatprep.subr.mxu1 %v8282_v51  ;;  %4380 = vmatpush3.msra.mxu0 %v6603_v47 }
 0x123   : > { %4407 = vmatpush3.msra.mxu1 %v8283_v11  ;;  %4381 = vmatprep.subr.mxu0 %v6683_v52 }
 0x124   : > { %4408 = vmatprep.subr.mxu1 %v8284_v1  ;;  %4382 = vmatpush3.msra.mxu0 %v6618_v20  ;;  %v8290_v20 = vld [vmem:[#allocation26_spill] sm:$0xff] }
 0x125   : > { %4409 = vmatpush3.msra.mxu1 %v8285_v60  ;;  %4383 = vmatprep.subr.mxu0 %v6727_v37 }
 0x126   : > { %4410 = vmatprep.subr.mxu1 %v8286_v61  ;;  %4384 = vmatpush3.msra.mxu0 %v6691_v5 }
 0x127   : > { %4411 = vmatpush3.msra.mxu1 %v8287_v38  ;;  %4385 = vmatprep.subr.mxu0 %v6746_v39 }
 0x128   : > { %4412 = vmatprep.subr.mxu1 %v8288_v53  ;;  %4386 = vmatpush3.msra.mxu0 %v6704_v25 }
 0x129   : > { %4413 = vmatpush3.msra.mxu1 %v8289_v42  ;;  %4387 = vmatprep.subr.mxu0 %v6760_v22 }
 0x12a   : > { %4414 = vmatprep.subr.mxu1 %v8290_v20  ;;  %4388 = vmatpush3.msra.mxu0 %v6764_v21  ;;  %v8291_v20 = vand.u32 4294901760, %v6318_v24  ;;  %v8296_v24 = vand.u32 4294901760, %v6333_v19  ;;  %v8301_v19 = vand.u32 4294901760, %v6715_v7 }
 0x12b   : > { %4415 = vmatpush3.msra.mxu1 %v6553_v2  ;;  %4389 = vmatprep.subr.mxu0 %v6779_v16  ;;  %v8292_v2 = vand.u32 4294901760, %v6300_v17  ;;  %v8293_v16 = vld [vmem:[#allocation29_spill] sm:$0xff]  ;;  %v8297_v17 = vand.u32 4294901760, %v6339_v46  ;;  %v8303_v46 = vand.u32 4294901760, %v6399_v41  ;;  %v8309_v41 = vand.u32 4294901760, %v8275_v14  ;;  %v282_v14 = vld [vmem:[%s7722_s1 + $0x360] sm:$0xff] }
 0x12c   : > { %4416 = vmatprep.subr.mxu1 %v6588_v34  ;;  %4390 = vmatpush3.msra.mxu0 %v6772_v62  ;;  %v8294_v62 = vand.u32 4294901760, %v6324_v8  ;;  %v8298_v8 = vand.u32 4294901760, %v6355_v57  ;;  %v8304_v57 = vand.u32 4294901760, %v6450_v28  ;;  %v8310_v28 = vand.u32 4294901760, %v6572_v48  ;;  %v299_v48 = vld [vmem:[%s7722_s1 + $0x3e8] sm:$0xff] }
 0x12d   : > { %2512 = vmatprep.mubr.f32.mxu0 %v6697_v18  ;;  %4417 = vmatpush3.msra.mxu1 %v6569_v63  ;;  %v8295_v63 = vand.u32 4294901760, %v6303_v4  ;;  %v8299_v4 = vand.u32 4294901760, %v6697_v18 }
 0x12e   : > { %2515 = vmatmul.mubr.f32.vlgmr.msra.gmra.mxu0 %v6715_v7  ;;  %4418 = vmatprep.subr.mxu1 %v6665_v9 }
 0x12f   : > { %4429 = vmatprep.subr.mxu0 %v8291_v20  ;;  %4419 = vmatpush3.msra.mxu1 %v6641_v27  ;;  %v8311_v20 = vand.u32 4294901760, %v6562_v44  ;;  %v283_v44 = vld [vmem:[%s7722_s1 + $0x368] sm:$0xff] }
 0x130   : > { %4430 = vmatpush3.msra.mxu0 %v8292_v2  ;;  %4420 = vmatprep.subr.mxu1 %v8293_v16  ;;  %v8300_v2 = vand.u32 4294901760, %v6361_v59  ;;  %v8305_v59 = vand.u32 4294901760, %v6429_v30  ;;  %v300_v30 = vld [vmem:[%s7722_s1 + $0x3f0] sm:$0xff] }
 0x131   : > { %4431 = vmatprep.subr.mxu0 %v8294_v62  ;;  %4421 = vmatpush3.msra.mxu1 %v6652_v54  ;;  %v8312_v62 = vand.u32 4294901760, %v6626_v15  ;;  %v298_v15 = vld [vmem:[%s7722_s1 + $0x3e0] sm:$0xff] }
 0x132   : > { %4432 = vmatpush3.msra.mxu0 %v8295_v63  ;;  %4422 = vmatprep.subr.mxu1 %v6723_v43  ;;  %v8302_v63 = vand.u32 4294901760, %v6423_v32  ;;  %v8306_v32 = vand.u32 4294901760, %v6496_v40  ;;  %v284_v40 = vld [vmem:[%s7722_s1 + $0x370] sm:$0xff] }
 0x133   : > { %4433 = vmatprep.subr.mxu0 %v8296_v24  ;;  %4423 = vmatpush3.msra.mxu1 %v6734_v10 }
 0x134   : > { %4434 = vmatpush3.msra.mxu0 %v8297_v17  ;;  %4424 = vmatprep.subr.mxu1 %v6740_v31  ;;  %v7013_v17 = vand.u32 4294901760, %v282_v14 }
 0x135   : > { %4435 = vmatprep.subr.mxu0 %v8298_v8  ;;  %4425 = vmatpush3.msra.mxu1 %v6742_v29  ;;  %v8323_v8 = vand.u32 4294901760, %v6727_v37 }
 0x136   : > { %2619 = vmatprep.mubr.f32.mxu1 %v8299_v4  ;;  %4436 = vmatpush3.msra.mxu0 %v8300_v2  ;;  %8322 = vst [vmem:[#allocation21_spill] sm:$0xff] %v7013_v17  ;;  %v296_v2 = vld [vmem:[%s7722_s1 + $0x3d0] sm:$0xff] }
 0x137   : > { %2623 = vmatmul.mubr.f32.vlgmr.msra.gmra.mxu1 %v8301_v19  ;;  %4437 = vmatprep.subr.mxu0 %v8302_v63  ;;  %v8325_v63 = vand.u32 4294901760, %v6691_v5 }
 0x138   : > { %4464 = vmatprep.subr.mxu1 %v6281_v23  ;;  %4438 = vmatpush3.msra.mxu0 %v8303_v46  ;;  %v8307_v23 = vand.u32 4294901760, %v8271_v58  ;;  %v8313_v58 = vand.u32 4294901760, %v8280_v13  ;;  %v8318_v13 = vand.u32 4294901760, %v6683_v52  ;;  %v281_v52 = vld [vmem:[%s7722_s1 + $0x358] sm:$0xff]  ;;  %v295_v46 = vld [vmem:[%s7722_s1 + $0x3c8] sm:$0xff] }
 0x139   : > { %4465 = vmatpush3.msra.mxu1 %v6265_v36  ;;  %4439 = vmatprep.subr.mxu0 %v8304_v57  ;;  %v301_v36 = vld [vmem:[%s7722_s1 + $0x3f8] sm:$0xff]  ;;  %v8326_v57 = vand.u32 4294901760, %v6746_v39  ;;  %v7060_v39 = vand.u32 4294901760, %v296_v2 }
 0x13a   : > { %4466 = vmatprep.subr.mxu1 %v6283_v45  ;;  %4440 = vmatpush3.msra.mxu0 %v8305_v59  ;;  %v8308_v45 = vand.u32 4294901760, %v8273_v55  ;;  %v6948_v18 = vand.u32 4294901760, %v301_v36  ;;  %v8314_v55 = vand.u32 4294901760, %v6655_v3  ;;  %v6994_v3 = vand.u32 4294901760, %v283_v44 }
 0x13b   : > { %4467 = vmatpush3.msra.mxu1 %v6267_v35  ;;  %4441 = vmatprep.subr.mxu0 %v8306_v32  ;;  %v285_v35 = vld [vmem:[%s7722_s1 + $0x378] sm:$0xff]  ;;  %v7046_v59 = vand.u32 4294901760, %v281_v52  ;;  %8330 = vst [vmem:[#allocation25_spill] sm:$0xff] %v7060_v39 }
 0x13c   : > { %4468 = vmatprep.subr.mxu1 %v8270_v26  ;;  %4442 = vmatpush3.msra.mxu0 %v8307_v23  ;;  %v6956_v7 = vand.u32 4294901760, %v285_v35  ;;  %v6964_v26 = vand.u32 4294901760, %v300_v30  ;;  %8317 = vst [vmem:[#allocation11_spill] sm:$0xff] %v6994_v3  ;;  %v7037_v37 = vsub.f32 %v283_v44, %v6994_v3  ;;  %v8329_v23 = vand.u32 4294901760, %v6704_v25 }
 0x13d   : > { %4469 = vmatpush3.msra.mxu1 %v8272_v0  ;;  %4443 = vmatprep.subr.mxu0 %v8308_v45  ;;  %v6972_v0 = vand.u32 4294901760, %v284_v40  ;;  %8327 = vst [vmem:[#allocation13_spill] sm:$0xff] %v7046_v59  ;;  %v8331_v45 = vand.u32 4294901760, %v6760_v22  ;;  %v7071_v25 = vand.u32 4294901760, %v295_v46  ;;  %v8334_v22 = vand.u32 4294901760, %v6764_v21 }
 0x13e   : > { %4470 = vmatprep.subr.mxu1 %v8274_v33  ;;  %4444 = vmatpush3.msra.mxu0 %v8309_v41  ;;  %v6980_v33 = vand.u32 4294901760, %v299_v48 }
 0x13f   : > { %4471 = vmatpush3.msra.mxu1 %v8276_v50  ;;  %4445 = vmatprep.subr.mxu0 %v8310_v28  ;;  %v6986_v50 = vsub.f32 %v301_v36, %v6948_v18  ;;  %v7011_v24 = vsub.f32 %v284_v40, %v6972_v0  ;;  %v7058_v36 = vsub.f32 %v282_v14, %v7013_v17  ;;  %v8335_v40 = vld [vmem:[#allocation23_spill] sm:$0xff] }
 0x140   : > { %4472 = vmatprep.subr.mxu1 %v8277_v56  ;;  %4446 = vmatpush3.msra.mxu0 %v8311_v20  ;;  %8315 = vst [vmem:[#allocation5_spill] sm:$0xff] %v6980_v33  ;;  %v8316_v56 = vand.u32 4294901760, %v6603_v47  ;;  %v7005_v47 = vsub.f32 %v300_v30, %v6964_v26  ;;  %v7031_v19 = vsub.f32 %v299_v48, %v6980_v33  ;;  %8333 = vst [vmem:[#allocation6_spill] sm:$0xff] %v7071_v25  ;;  %v279_v30 = vld [vmem:[%s7722_s1 + $0x348] sm:$0xff] }
 0x141   : > { %4473 = vmatpush3.msra.mxu1 %v8278_v12  ;;  %4447 = vmatprep.subr.mxu0 %v8312_v62  ;;  %v6992_v12 = vsub.f32 %v285_v35, %v6956_v7  ;;  %v8332_v35 = vld [vmem:[#allocation26_spill] sm:$0xff]  ;;  %v7930_v48 = vand.u32 4294901760, %v7037_v37 }
 0x142   : > { %4474 = vmatprep.subr.mxu1 %v8279_v49  ;;  %4448 = vmatpush3.msra.mxu0 %v8313_v58  ;;  %v297_v49 = vld [vmem:[%s7722_s1 + $0x3d8] sm:$0xff]  ;;  %v7934_v5 = vand.u32 4294901760, %v7005_v47  ;;  %v8336_v62 = vld [vmem:[#allocation30_spill] sm:$0xff]  ;;  %v7093_v58 = vsub.f32 %v281_v52, %v7046_v59  ;;  %v7935_v52 = vand.u32 4294901760, %v7058_v36 }
 0x143   : > { %4475 = vmatpush3.msra.mxu1 %v8281_v6  ;;  %4449 = vmatprep.subr.mxu0 %v8314_v55  ;;  %v7002_v6 = vand.u32 4294901760, %v298_v15  ;;  %v7024_v4 = vand.u32 4294901760, %v297_v49  ;;  %v8337_v44 = vand.u32 4294901760, %v8336_v62  ;;  %v294_v55 = vld [vmem:[%s7722_s1 + $0x3c0] sm:$0xff] }
 0x144   : > { %4476 = vmatprep.subr.mxu1 %v8282_v51  ;;  %4450 = vmatpush3.msra.mxu0 %v8316_v56  ;;  %v8320_v51 = vld [vmem:[#allocation28_spill] sm:$0xff]  ;;  %v7098_v21 = vsub.f32 %v7005_v47, %v7934_v5  ;;  %v8338_v56 = vld [vmem:[#allocation17_spill] sm:$0xff] }
 0x145   : > { %4477 = vmatpush3.msra.mxu1 %v8283_v11  ;;  %4451 = vmatprep.subr.mxu0 %v8318_v13  ;;  %8319 = vst [vmem:[#allocation19_spill] sm:$0xff] %v7002_v6  ;;  %v8321_v11 = vand.u32 4294901760, %v8320_v51  ;;  %8324 = vst [vmem:[#allocation22_spill] sm:$0xff] %v7024_v4  ;;  %v7078_v28 = vsub.f32 %v297_v49, %v7024_v4  ;;  %v8339_v49 = vand.u32 4294901760, %v8338_v56  ;;  %v8340_v13 = vld [vmem:[#allocation32_spill] sm:$0xff]  ;;  %v277_v56 = vld [vmem:[%s7722_s1 + $0x338] sm:$0xff] }
 0x146   : > { %4478 = vmatprep.subr.mxu1 %v8284_v1  ;;  %v280_v1 = vld [vmem:[%s7722_s1 + $0x350] sm:$0xff]  ;;  %2789 = vmatprep.mubr.f32.mxu0 %v8340_v13 }
 0x147   : > { %4452 = vmatpush3.msra.mxu0 %v8321_v11  ;;  %4479 = vmatpush3.msra.mxu1 %v8285_v60  ;;  %v7937_v60 = vand.u32 4294901760, %v6986_v50  ;;  %v7049_v32 = vand.u32 4294901760, %v280_v1  ;;  %v7118_v11 = vand.u32 4294901760, %v279_v30 }
 0x148   : > { %4453 = vmatprep.subr.mxu0 %v8323_v8  ;;  %4480 = vmatprep.subr.mxu1 %v8286_v61  ;;  %v7936_v61 = vand.u32 4294901760, %v6992_v12  ;;  %v8342_v8 = vld [vmem:[#allocation31_spill] sm:$0xff] }
 0x149   : > { %4454 = vmatpush3.msra.mxu0 %v8325_v63  ;;  %4481 = vmatpush3.msra.mxu1 %v8287_v38  ;;  %8328 = vst [vmem:[#allocation16_spill] sm:$0xff] %v7049_v32  ;;  %v7052_v38 = vsub.f32 %v298_v15, %v7002_v6  ;;  %v7069_v41 = vsub.f32 %v6986_v50, %v7937_v60  ;;  %8341 = vst [vmem:[#allocation7_spill] sm:$0xff] %v7118_v11  ;;  %v8343_v63 = vld [vmem:[#allocation33_spill] sm:$0xff] }
 0x14a   : > { %4455 = vmatprep.subr.mxu0 %v8326_v57  ;;  %4482 = vmatprep.subr.mxu1 %v8288_v53  ;;  %v7933_v53 = vand.u32 4294901760, %v7011_v24  ;;  %v7086_v20 = vsub.f32 %v6992_v12, %v7936_v61  ;;  %v7101_v15 = vsub.f32 %v280_v1, %v7049_v32  ;;  %v7122_v1 = vsub.f32 %v296_v2, %v7060_v39  ;;  %v274_v2 = vld [vmem:[%s7722_s1 + $0x320] sm:$0xff] }
 0x14b   : > { %4456 = vmatpush3.msra.mxu0 %v8329_v23  ;;  %4483 = vmatpush3.msra.mxu1 %v8289_v42  ;;  %v7932_v42 = vand.u32 4294901760, %v7031_v19  ;;  %v7931_v14 = vand.u32 4294901760, %v7052_v38 }
 0x14c   : > { %4457 = vmatprep.subr.mxu0 %v8331_v45  ;;  %4484 = vmatprep.subr.mxu1 %v8332_v35  ;;  %v7116_v51 = vsub.f32 %v7011_v24, %v7933_v53  ;;  %v7938_v45 = vand.u32 4294901760, %v7078_v28  ;;  %v7134_v35 = vsub.f32 %v295_v46, %v7071_v25  ;;  %v293_v46 = vld [vmem:[%s7722_s1 + $0x3b8] sm:$0xff]  ;;  %v276_v53 = vld [vmem:[%s7722_s1 + $0x330] sm:$0xff] }
 0x14d   : > { %4458 = vmatpush3.msra.mxu0 %v8334_v22  ;;  %4485 = vmatpush3.msra.mxu1 %v8335_v40  ;;  %v7130_v23 = vsub.f32 %v7031_v19, %v7932_v42  ;;  %v7142_v22 = vsub.f32 %v7037_v37, %v7930_v48  ;;  %v7144_v40 = vand.u32 4294901760, %v294_v55  ;;  %v7168_v48 = vsub.f32 %v279_v30, %v7118_v11 }
 0x14e   : > { %4459 = vmatprep.subr.mxu0 %v8337_v44  ;;  %4486 = vmatprep.subr.mxu1 %v6588_v34  ;;  %v278_v34 = vld [vmem:[%s7722_s1 + $0x340] sm:$0xff]  ;;  %v7157_v44 = vsub.f32 %v7052_v38, %v7931_v14  ;;  %v7173_v14 = vsub.f32 %v7058_v36, %v7935_v52  ;;  %v7941_v42 = vand.u32 4294901760, %v7122_v1  ;;  %v7182_v5 = vand.u32 4294901760, %v293_v46  ;;  %v292_v52 = vld [vmem:[%s7722_s1 + $0x3b0] sm:$0xff] }
 0x14f   : > { %4460 = vmatpush3.msra.mxu0 %v8339_v49  ;;  %4487 = vmatpush3.msra.mxu1 %v8342_v8  ;;  %8344 = vst [vmem:[#allocation18_spill] sm:$0xff] %v7144_v40  ;;  %v7146_v62 = vand.u32 4294901760, %v278_v34  ;;  %v7939_v49 = vand.u32 4294901760, %v7093_v58  ;;  %v7940_v8 = vand.u32 4294901760, %v7101_v15  ;;  %8346 = vst [vmem:[#allocation8_spill] sm:$0xff] %v7168_v48  ;;  %v7187_v30 = vsub.f32 %v7078_v28, %v7938_v45  ;;  %v275_v45 = vld [vmem:[%s7722_s1 + $0x328] sm:$0xff] }
 0x150   : > { %2791 = vmatmul.mubr.f32.vlgmr.msra.gmra.mxu0 %v8343_v63  ;;  %4488 = vmatprep.subr.mxu1 %v6665_v9  ;;  %8347 = vst [vmem:[#allocation10_spill] sm:$0xff] %v7182_v5  ;;  %v7942_v61 = vand.u32 4294901760, %v7134_v35  ;;  %v7247_v57 = vand.u32 4294901760, %v275_v45 }
 0x151   : > { %4499 = vmatprep.subr.mxu0 %v6948_v18  ;;  %8345 = vst [vmem:[#allocation24_spill] sm:$0xff] %v7146_v62  ;;  %4489 = vmatpush3.msra.mxu1 %v6641_v27  ;;  %v7197_v60 = vsub.f32 %v278_v34, %v7146_v62  ;;  %v7205_v27 = vsub.f32 %v294_v55, %v7144_v40  ;;  %v7223_v55 = vld [vmem:[%s5302_s7 + $0x18] sm:$0xff] }
 0x152   : > { %4500 = vmatpush3.msra.mxu0 %v6956_v7  ;;  %4490 = vmatprep.subr.mxu1 %v8293_v16  ;;  %v7199_v16 = vand.u32 4294901760, %v277_v56  ;;  %v7213_v34 = vsub.f32 %v7093_v58, %v7939_v49  ;;  %v7220_v9 = vsub.f32 %v7101_v15, %v7940_v8  ;;  %v7233_v49 = vsub.f32 %v7122_v1, %v7941_v42  ;;  %v291_v8 = vld [vmem:[%s7722_s1 + $0x3a8] sm:$0xff]  ;;  %v290_v42 = vld [vmem:[%s7722_s1 + $0x3a0] sm:$0xff] }
 0x153   : > { %4501 = vmatprep.subr.mxu0 %v6964_v26  ;;  %4491 = vmatpush3.msra.mxu1 %v6652_v54  ;;  %8348 = vst [vmem:[#allocation27_spill] sm:$0xff] %v7197_v60  ;;  %8350 = vst [vmem:[#allocation12_spill] sm:$0xff] %v7205_v27  ;;  %v7215_v54 = vand.u32 4294901760, %v276_v53 }
 0x154   : > { %4502 = vmatpush3.msra.mxu0 %v6972_v0  ;;  %4492 = vmatprep.subr.mxu1 %v6723_v43  ;;  %8349 = vst [vmem:[#allocation9_spill] sm:$0xff] %v7199_v16  ;;  %v7228_v43 = vand.u32 4294901760, %v292_v52  ;;  %8353 = vst [vmem:[#allocation15_spill] sm:$0xff] %v7247_v57 }
 0x155   : > { %4503 = vmatprep.subr.mxu0 %v6980_v33  ;;  %4493 = vmatpush3.msra.mxu1 %v6734_v10  ;;  %8351 = vst [vmem:[#allocation20_spill] sm:$0xff] %v7215_v54  ;;  %v7245_v10 = vsub.f32 %v7134_v35, %v7942_v61  ;;  %v8357_v61 = vand.u32 4294901760, %v7086_v20  ;;  %v8360_v20 = vand.u32 4294901760, %v7098_v21  ;;  %v8362_v21 = vand.u32 4294901760, %v7205_v27 }
 0x156   : > { %4504 = vmatpush3.msra.mxu0 %v6994_v3  ;;  %4494 = vmatprep.subr.mxu1 %v6740_v31  ;;  %8352 = vst [vmem:[#allocation14_spill] sm:$0xff] %v7228_v43  ;;  %v8354_v3 = vand.u32 4294901760, %v7069_v41  ;;  %v273_v31 = vld [vmem:[%s7722_s1 + $0x318] sm:$0xff]  ;;  %v8358_v41 = vand.u32 4294901760, %v7168_v48 }
 0x157   : > { %4505 = vmatprep.subr.mxu0 %v7002_v6  ;;  %4495 = vmatpush3.msra.mxu1 %v6742_v29  ;;  %v7256_v29 = vsub.f32 %v293_v46, %v7182_v5  ;;  %v309_v6 = vcombine.high %v7223_v55, %v7223_v55  ;;  %v3045_v46 = vand.u32 4294901760, %v7213_v34  ;;  %v7289_v34 = vand.u32 4294901760, %v290_v42 }
 0x158   : > { %2893 = vmatprep.mubr.f32.mxu1 %v8340_v13  ;;  %4506 = vmatpush3.msra.mxu0 %v7013_v17  ;;  %v7261_v13 = vsub.f32 %v277_v56, %v7199_v16  ;;  %v7272_v17 = vsub.f32 %v276_v53, %v7215_v54  ;;  %v7275_v56 = vand.u32 4294901760, %v291_v8  ;;  %v7287_v53 = vsub.f32 %v7168_v48, %v8358_v41  ;;  %v289_v41 = vld [vmem:[%s7722_s1 + $0x398] sm:$0xff] }
 0x159   : > { %2895 = vmatmul.mubr.f32.vlgmr.msra.gmra.mxu1 %v8343_v63  ;;  %4507 = vmatprep.subr.mxu0 %v7024_v4  ;;  %v7291_v63 = vand.u32 4294901760, %v274_v2  ;;  %v272_v4 = vld [vmem:[%s7722_s1 + $0x310] sm:$0xff]  ;;  %v7308_v48 = vsub.f32 %v292_v52, %v7228_v43  ;;  %v7323_v33 = vand.u32 4294901760, %v273_v31 }
 0x15a   : > { %4534 = vmatprep.subr.mxu1 %v8354_v3  ;;  %8355 = vst [vmem:[#allocation29_spill] sm:$0xff] %v7272_v17  ;;  %8356 = vst [vmem:[#allocation28_spill] sm:$0xff] %v7275_v56  ;;  %4508 = vmatpush3.msra.mxu0 %v7046_v59  ;;  %v3164_v3 = vand.u32 4294901760, %v7233_v49  ;;  %v7301_v49 = vsub.f32 %v275_v45, %v7247_v57  ;;  %v8363_v45 = vand.u32 4294901760, %v7197_v60  ;;  %v288_v52 = vld [vmem:[%s7722_s1 + $0x390] sm:$0xff]  ;;  %v7328_v59 = vand.u32 4294901760, %v309_v6 }
 0x15b   : > { %4535 = vmatpush3.msra.mxu1 %v8357_v61  ;;  %8359 = vst [vmem:[#allocation26_spill] sm:$0xff] %v7291_v63  ;;  %4509 = vmatprep.subr.mxu0 %v7060_v39  ;;  %v8361_v39 = vand.u32 4294901760, %v7116_v51  ;;  %v7375_v51 = vsub.f32 %v273_v31, %v7323_v33  ;;  %v8377_v31 = vand.u32 4294901760, %v7220_v9 }
 0x15c   : > { %4536 = vmatprep.subr.mxu1 %v8360_v20  ;;  %4510 = vmatpush3.msra.mxu0 %v7049_v32  ;;  %v7316_v20 = vsub.f32 %v7205_v27, %v8362_v21  ;;  %v7321_v61 = vsub.f32 %v7197_v60, %v8363_v45  ;;  %8364 = vst [vmem:[#allocation23_spill] sm:$0xff] %v7328_v59  ;;  %v7334_v21 = vand.u32 4294901760, %v272_v4  ;;  %v7340_v32 = vand.u32 4294901760, %v7223_v55 }
 0x15d   : > { %4537 = vmatpush3.msra.mxu1 %v8361_v39  ;;  %4511 = vmatprep.subr.mxu0 %v7071_v25  ;;  %v8365_v39 = vand.u32 4294901760, %v7130_v23  ;;  %v7337_v45 = vsub.f32 %v291_v8, %v7275_v56  ;;  %v8367_v60 = vand.u32 4294901760, %v7142_v22  ;;  %v3059_v25 = vand.u32 4294901760, %v7287_v53  ;;  %v271_v22 = vld [vmem:[%s7722_s1 + $0x308] sm:$0xff] }
 0x15e   : > { %8366 = vst [vmem:[#allocation30_spill] sm:$0xff] %v7340_v32  ;;  %4512 = vmatpush3.msra.mxu0 %v7118_v11  ;;  %v7347_v23 = vsub.f32 %v274_v2, %v7291_v63  ;;  %v8369_v8 = vand.u32 4294901760, %v7157_v44  ;;  %v8370_v27 = vand.u32 4294901760, %v7256_v29  ;;  %v287_v2 = vld [vmem:[%s7722_s1 + $0x388] sm:$0xff]  ;;  %v7367_v53 = vsub.f32 %v290_v42, %v7289_v34  ;;  %3237 = vmatprep.mubr.f32.mxu1 %v7328_v59 }
 0x15f   : > { %4538 = vmatprep.subr.mxu1 %v8365_v39  ;;  %v7349_v39 = vand.u32 4294901760, %v289_v41  ;;  %4513 = vmatprep.subr.mxu0 %v7144_v40  ;;  %v8372_v44 = vand.u32 4294901760, %v7173_v14  ;;  %v7381_v40 = vsub.f32 %v309_v6, %v7328_v59  ;;  %v8373_v42 = vand.u32 4294901760, %v7187_v30  ;;  %v270_v6 = vld [vmem:[%s7722_s1 + $0x300] sm:$0xff] }
 0x160   : > { %4539 = vmatpush3.msra.mxu1 %v8367_v60  ;;  %8368 = vst [vmem:[#allocation17_spill] sm:$0xff] %v7347_v23  ;;  %v7358_v11 = vsub.f32 %v7256_v29, %v8370_v27  ;;  %v7360_v60 = vand.u32 4294901760, %v288_v52  ;;  %4514 = vmatpush3.msra.mxu0 %v7146_v62  ;;  %v3066_v27 = vand.u32 4294901760, %v7321_v61  ;;  %v8374_v14 = vand.u32 4294901760, %v7261_v13  ;;  %v8411_v59 = vld [vmem:[#allocation20_spill] sm:$0xff] }
 0x161   : > { %4540 = vmatprep.subr.mxu1 %v8369_v8  ;;  %v3178_v8 = vand.u32 4294901760, %v7316_v20  ;;  %4515 = vmatprep.subr.mxu0 %v7182_v5  ;;  %v7390_v61 = vsub.f32 %v272_v4, %v7334_v21  ;;  %v7401_v30 = vsub.f32 %v7223_v55, %v7340_v32  ;;  %v8375_v4 = vand.u32 4294901760, %v7272_v17 }
 0x162   : > { %8371 = vst [vmem:[#allocation32_spill] sm:$0xff] %v7360_v60  ;;  %4541 = vmatpush3.msra.mxu1 %v8372_v44  ;;  %v3072_v20 = vsub.f32 %v7261_v13, %v8374_v14  ;;  %v286_v44 = vld [vmem:[%s7722_s1 + $0x380] sm:$0xff]  ;;  %4516 = vmatpush3.msra.mxu0 %v7199_v16  ;;  %v7407_v14 = vand.u32 4294901760, %v287_v2  ;;  %v7411_v5 = vsub.f32 %v289_v41, %v7349_v39  ;;  %v3185_v55 = vand.u32 4294901760, %v7358_v11 }
 0x163   : > { %4542 = vmatprep.subr.mxu1 %v8373_v42  ;;  %v3079_v42 = vsub.f32 %v7272_v17, %v8375_v4  ;;  %4517 = vmatprep.subr.mxu0 %v7228_v43  ;;  %v8376_v62 = vand.u32 4294901760, %v7308_v48  ;;  %v7418_v16 = vand.u32 4294901760, %v271_v22  ;;  %v7424_v41 = vand.u32 4294901760, %v286_v44 }
 0x164   : > { %4543 = vmatpush3.msra.mxu1 %v3045_v46  ;;  %4518 = vmatpush3.msra.mxu0 %v7215_v54  ;;  %v7426_v17 = vand.u32 4294901760, %v270_v6  ;;  %v7430_v11 = vsub.f32 %v288_v52, %v7360_v60  ;;  %v3073_v4 = vand.u32 4294901760, %v3072_v20  ;;  %v8379_v54 = vand.u32 4294901760, %v7337_v45 }
 0x165   : > { %4544 = vmatprep.subr.mxu1 %v3164_v3  ;;  %v3191_v46 = vsub.f32 %v7308_v48, %v8376_v62  ;;  %4519 = vmatprep.subr.mxu0 %v7275_v56  ;;  %v8378_v62 = vand.u32 4294901760, %v7245_v10  ;;  %v3080_v3 = vand.u32 4294901760, %v3079_v42  ;;  %v8380_v52 = vand.u32 4294901760, %v7301_v49 }
 0x166   : > { %4545 = vmatpush3.msra.mxu1 %v8377_v31  ;;  %v3198_v9 = vsub.f32 %v7337_v45, %v8379_v54  ;;  %v7985_v31 = vand.u32 4294901760, %v7347_v23  ;;  %4520 = vmatpush3.msra.mxu0 %v7247_v57  ;;  %v7446_v20 = vsub.f32 %v287_v2, %v7407_v14  ;;  %v8381_v43 = vand.u32 4294901760, %v7367_v53 }
 0x167   : > { %4546 = vmatprep.subr.mxu1 %v8378_v62  ;;  %v3086_v56 = vsub.f32 %v7301_v49, %v8380_v52  ;;  %4521 = vmatprep.subr.mxu0 %v7289_v34  ;;  %v3192_v54 = vand.u32 4294901760, %v3191_v46  ;;  %v7450_v62 = vsub.f32 %v271_v22, %v7418_v16  ;;  %v7458_v52 = vsub.f32 %v270_v6, %v7426_v17 }
 0x168   : > { %4547 = vmatpush3.msra.mxu1 %v3059_v25  ;;  %v3205_v25 = vsub.f32 %v7367_v53, %v8381_v43  ;;  %4522 = vmatpush3.msra.mxu0 %v7291_v63  ;;  %v8383_v2 = vand.u32 4294901760, %v7381_v40  ;;  %v7465_v22 = vsub.f32 %v286_v44, %v7424_v41  ;;  %v3199_v43 = vand.u32 4294901760, %v3198_v9 }
 0x169   : > { %4548 = vmatprep.subr.mxu1 %v3178_v8  ;;  %8382 = vst [vmem:[#allocation31_spill] sm:$0xff] %v7458_v52  ;;  %4523 = vmatprep.subr.mxu0 %v7349_v39  ;;  %v8385_v6 = vand.u32 4294901760, %v7401_v30  ;;  %v8386_v44 = vand.u32 4294901760, %v7411_v5  ;;  %v7988_v10 = vand.u32 4294901760, %v7458_v52 }
 0x16a   : > { %4549 = vmatpush3.msra.mxu1 %v3066_v27  ;;  %v2999_v8 = vsub.f32 %v7381_v40, %v8383_v2  ;;  %8384 = vst [vmem:[#allocation33_spill] sm:$0xff] %v7465_v22  ;;  %v3093_v27 = vsub.f32 %v7347_v23, %v7985_v31  ;;  %4524 = vmatpush3.msra.mxu0 %v7323_v33  ;;  %v3087_v2 = vand.u32 4294901760, %v3086_v56  ;;  %v3206_v9 = vand.u32 4294901760, %v3205_v25 }
 0x16b   : > { %4550 = vmatprep.subr.mxu1 %v3185_v55  ;;  %v3005_v42 = vsub.f32 %v7401_v30, %v8385_v6  ;;  %v3212_v46 = vsub.f32 %v7411_v5, %v8386_v44  ;;  %4525 = vmatprep.subr.mxu0 %v7360_v60  ;;  %v8387_v31 = vand.u32 4294901760, %v7375_v51  ;;  %v7989_v55 = vand.u32 4294901760, %v7465_v22 }
 0x16c   : > { %4551 = vmatpush3.msra.mxu1 %v3073_v4  ;;  %4526 = vmatpush3.msra.mxu0 %v7334_v21  ;;  %v3000_v56 = vand.u32 4294901760, %v2999_v8  ;;  %v8388_v4 = vand.u32 4294901760, %v7430_v11  ;;  %v8389_v60 = vand.u32 4294901760, %v7390_v61  ;;  %v8390_v8 = vand.u32 4294901760, %v7446_v20 }
 0x16d   : > { %4552 = vmatprep.subr.mxu1 %v3192_v54  ;;  %v3100_v6 = vsub.f32 %v7375_v51, %v8387_v31  ;;  %4527 = vmatprep.subr.mxu0 %v7407_v14  ;;  %v3094_v54 = vand.u32 4294901760, %v3093_v27  ;;  %v3006_v25 = vand.u32 4294901760, %v3005_v42  ;;  %v8391_v42 = vand.u32 4294901760, %v7450_v62 }
 0x16e   : > { %4553 = vmatpush3.msra.mxu1 %v3080_v3  ;;  %v3219_v44 = vsub.f32 %v7430_v11, %v8388_v4  ;;  %v3107_v31 = vsub.f32 %v7390_v61, %v8389_v60  ;;  %4528 = vmatpush3.msra.mxu0 %v7418_v16  ;;  %v3213_v3 = vand.u32 4294901760, %v3212_v46  ;;  %v3226_v4 = vsub.f32 %v7446_v20, %v8390_v8  ;;  %v8395_v8 = vld [vmem:[#allocation12_spill] sm:$0xff] }
 0x16f   : > { %4554 = vmatprep.subr.mxu1 %v3199_v43  ;;  %4529 = vmatprep.subr.mxu0 %v7424_v41  ;;  %v3101_v43 = vand.u32 4294901760, %v3100_v6  ;;  %v3114_v27 = vsub.f32 %v7450_v62, %v8391_v42  ;;  %v3233_v46 = vsub.f32 %v7465_v22, %v7989_v55  ;;  %v8398_v42 = vld [vmem:[#allocation21_spill] sm:$0xff] }
 0x170   : > { %4555 = vmatpush3.msra.mxu1 %v3087_v2  ;;  %4530 = vmatpush3.msra.mxu0 %v7426_v17  ;;  %v3220_v60 = vand.u32 4294901760, %v3219_v44  ;;  %v3108_v2 = vand.u32 4294901760, %v3107_v31  ;;  %v3227_v6 = vand.u32 4294901760, %v3226_v4  ;;  %v8393_v31 = vld [vmem:[#allocation8_spill] sm:$0xff]  ;;  %v8396_v4 = vld [vmem:[#allocation19_spill] sm:$0xff]  ;;  %v8409_v55 = vld [vmem:[#allocation9_spill] sm:$0xff] }
 0x171   : > { %4556 = vmatprep.subr.mxu1 %v3206_v9  ;;  %3001 = vmatprep.mubr.f32.mxu0 %v3000_v56  ;;  %v3121_v9 = vsub.f32 %v7458_v52, %v7988_v10  ;;  %v3115_v56 = vand.u32 4294901760, %v3114_v27  ;;  %v3234_v44 = vand.u32 4294901760, %v3233_v46  ;;  %v8399_v27 = vld [vmem:[#allocation22_spill] sm:$0xff]  ;;  %v8401_v46 = vld [vmem:[#allocation25_spill] sm:$0xff] }
 0x172   : > { %4557 = vmatpush3.msra.mxu1 %v3094_v54  ;;  %3007 = vmatmul.mubr.f32.vlgmr.msra.gmra.mxu0 %v3006_v25  ;;  %v8392_v25 = vld [vmem:[#allocation5_spill] sm:$0xff]  ;;  %v8408_v10 = vld [vmem:[#allocation10_spill] sm:$0xff] }
 0x173   : > { %4558 = vmatprep.subr.mxu1 %v3213_v3  ;;  %4569 = vmatprep.subr.mxu0 %v6986_v50  ;;  %v3122_v54 = vand.u32 4294901760, %v3121_v9  ;;  %v8394_v3 = vld [vmem:[#allocation11_spill] sm:$0xff]  ;;  %v8403_v9 = vld [vmem:[#allocation16_spill] sm:$0xff] }
 0x174   : > { %4559 = vmatpush3.msra.mxu1 %v3101_v43  ;;  %4570 = vmatpush3.msra.mxu0 %v6992_v12  ;;  %v8397_v43 = vld [vmem:[#allocation27_spill] sm:$0xff] }
 0x175   : > { %4560 = vmatprep.subr.mxu1 %v3220_v60  ;;  %4571 = vmatprep.subr.mxu0 %v7005_v47  ;;  %v8400_v60 = vld [vmem:[#allocation13_spill] sm:$0xff] }
 0x176   : > { %4561 = vmatpush3.msra.mxu1 %v3108_v2  ;;  %4572 = vmatpush3.msra.mxu0 %v7011_v24  ;;  %v8402_v2 = vld [vmem:[#allocation29_spill] sm:$0xff] }
 0x177   : > { %4562 = vmatprep.subr.mxu1 %v3227_v6  ;;  %4573 = vmatprep.subr.mxu0 %v7031_v19  ;;  %v8404_v6 = vld [vmem:[#allocation6_spill] sm:$0xff] }
 0x178   : > { %4563 = vmatpush3.msra.mxu1 %v3115_v56  ;;  %4574 = vmatpush3.msra.mxu0 %v7037_v37  ;;  %v8405_v56 = vld [vmem:[#allocation7_spill] sm:$0xff] }
 0x179   : > { %4564 = vmatprep.subr.mxu1 %v3234_v44  ;;  %4575 = vmatprep.subr.mxu0 %v7052_v38  ;;  %v8406_v44 = vld [vmem:[#allocation18_spill] sm:$0xff] }
 0x17a   : > { %4565 = vmatpush3.msra.mxu1 %v3122_v54  ;;  %4576 = vmatpush3.msra.mxu0 %v7058_v36  ;;  %v8407_v54 = vld [vmem:[#allocation24_spill] sm:$0xff] }
 0x17b   : > { %3239 = vmatmul.mubr.f32.vlgmr.msra.gmra.mxu1 %v7340_v32  ;;  %4577 = vmatprep.subr.mxu0 %v7078_v28  ;;  %v8410_v32 = vld [vmem:[#allocation14_spill] sm:$0xff] }
 0x17c   : > { %4604 = vmatprep.subr.mxu1 %v6948_v18  ;;  %4578 = vmatpush3.msra.mxu0 %v7093_v58 }
 0x17d   : > { %4605 = vmatpush3.msra.mxu1 %v6956_v7  ;;  %4579 = vmatprep.subr.mxu0 %v7122_v1 }
 0x17e   : > { %4606 = vmatprep.subr.mxu1 %v6964_v26  ;;  %4580 = vmatpush3.msra.mxu0 %v7101_v15 }
 0x17f   : > { %4607 = vmatpush3.msra.mxu1 %v6972_v0  ;;  %4581 = vmatprep.subr.mxu0 %v7134_v35 }
 0x180   : > { %4608 = vmatprep.subr.mxu1 %v8392_v25  ;;  %4582 = vmatpush3.msra.mxu0 %v8393_v31 }
 0x181   : > { %4609 = vmatpush3.msra.mxu1 %v8394_v3  ;;  %4583 = vmatprep.subr.mxu0 %v8395_v8 }
 0x182   : > { %4610 = vmatprep.subr.mxu1 %v8396_v4  ;;  %4584 = vmatpush3.msra.mxu0 %v8397_v43 }
 0x183   : > { %4611 = vmatpush3.msra.mxu1 %v8398_v42  ;;  %4585 = vmatprep.subr.mxu0 %v7256_v29 }
 0x184   : > { %4612 = vmatprep.subr.mxu1 %v8399_v27  ;;  %4586 = vmatpush3.msra.mxu0 %v7261_v13 }
 0x185   : > { %4613 = vmatpush3.msra.mxu1 %v8400_v60  ;;  %4587 = vmatprep.subr.mxu0 %v7308_v48 }
 0x186   : > { %4614 = vmatprep.subr.mxu1 %v8401_v46  ;;  %4588 = vmatpush3.msra.mxu0 %v8402_v2 }
 0x187   : > { %4615 = vmatpush3.msra.mxu1 %v8403_v9  ;;  %4589 = vmatprep.subr.mxu0 %v7337_v45 }
 0x188   : > { %4616 = vmatprep.subr.mxu1 %v8404_v6  ;;  %4590 = vmatpush3.msra.mxu0 %v7301_v49 }
 0x189   : > { %4617 = vmatpush3.msra.mxu1 %v8405_v56  ;;  %4591 = vmatprep.subr.mxu0 %v7367_v53 }
 0x18a   : > { %4618 = vmatprep.subr.mxu1 %v8406_v44  ;;  %4592 = vmatpush3.msra.mxu0 %v7347_v23  ;;  %v8412_v23 = vld [vmem:[#allocation28_spill] sm:$0xff] }
 0x18b   : > { %4619 = vmatpush3.msra.mxu1 %v8407_v54  ;;  %4593 = vmatprep.subr.mxu0 %v7411_v5 }
 0x18c   : > { %4620 = vmatprep.subr.mxu1 %v8408_v10  ;;  %4594 = vmatpush3.msra.mxu0 %v7375_v51 }
 0x18d   : > { %4621 = vmatpush3.msra.mxu1 %v8409_v55  ;;  %4595 = vmatprep.subr.mxu0 %v7430_v11 }
 0x18e   : > { %4622 = vmatprep.subr.mxu1 %v8410_v32  ;;  %4596 = vmatpush3.msra.mxu0 %v7390_v61 }
 0x18f   : > { %4623 = vmatpush3.msra.mxu1 %v8411_v59  ;;  %4597 = vmatprep.subr.mxu0 %v7446_v20 }
 0x190   : > { %4624 = vmatprep.subr.mxu1 %v8412_v23  ;;  %4598 = vmatpush3.msra.mxu0 %v7450_v62  ;;  %v8413_v23 = vand.u32 4294901760, %v6986_v50  ;;  %v8418_v50 = vand.u32 4294901760, %v7031_v19  ;;  %v8423_v19 = vand.u32 4294901760, %v7401_v30 }
 0x191   : > { %4625 = vmatpush3.msra.mxu1 %v7247_v57  ;;  %4599 = vmatprep.subr.mxu0 %v7465_v22  ;;  %v8414_v57 = vand.u32 4294901760, %v6992_v12  ;;  %v8415_v22 = vld [vmem:[#allocation32_spill] sm:$0xff]  ;;  %v8419_v12 = vand.u32 4294901760, %v7037_v37  ;;  %v8425_v37 = vand.u32 4294901760, %v7093_v58  ;;  %v8433_v58 = vand.u32 4294901760, %v7261_v13 }
 0x192   : > { %4626 = vmatprep.subr.mxu1 %v7289_v34  ;;  %4600 = vmatpush3.msra.mxu0 %v7458_v52  ;;  %v8416_v52 = vand.u32 4294901760, %v7005_v47  ;;  %v8420_v47 = vand.u32 4294901760, %v7052_v38  ;;  %v8426_v38 = vand.u32 4294901760, %v7122_v1  ;;  %v8435_v1 = vand.u32 4294901760, %v8402_v2 }
 0x193   : > { %3374 = vmatprep.mubr.f32.mxu0 %v7381_v40  ;;  %4627 = vmatpush3.msra.mxu1 %v7291_v63  ;;  %v8417_v63 = vand.u32 4294901760, %v7011_v24  ;;  %v8421_v24 = vand.u32 4294901760, %v7381_v40  ;;  %v8437_v40 = vand.u32 4294901760, %v7301_v49  ;;  %v8442_v49 = vand.u32 4294901760, %v7375_v51 }
 0x194   : > { %3377 = vmatmul.mubr.f32.vlgmr.msra.gmra.mxu0 %v7401_v30  ;;  %4628 = vmatprep.subr.mxu1 %v7349_v39  ;;  %v8446_v30 = vld [vmem:[#allocation28_spill] sm:$0xff]  ;;  %v8447_v51 = vand.u32 4294901760, %v7450_v62  ;;  %v3936_v62 = vpop.f32.mrf.mxu1 }
 0x195   : > { %4639 = vmatprep.subr.mxu0 %v8413_v23  ;;  %4629 = vmatpush3.msra.mxu1 %v7323_v33  ;;  %v8443_v23 = vand.u32 4294901760, %v7430_v11 }
 0x196   : > { %4640 = vmatpush3.msra.mxu0 %v8414_v57  ;;  %4630 = vmatprep.subr.mxu1 %v8415_v22  ;;  %v8422_v57 = vand.u32 4294901760, %v7058_v36  ;;  %v8427_v36 = vand.u32 4294901760, %v7101_v15  ;;  %v8434_v15 = vand.u32 4294901760, %v7308_v48  ;;  %v8438_v48 = vand.u32 4294901760, %v7367_v53 }
 0x197   : > { %4641 = vmatprep.subr.mxu0 %v8416_v52  ;;  %4631 = vmatpush3.msra.mxu1 %v7334_v21  ;;  %v8444_v53 = vand.u32 4294901760, %v7390_v61  ;;  %v8449_v52 = vld [vmem:[#allocation33_spill] sm:$0xff] }
 0x198   : > { %4642 = vmatpush3.msra.mxu0 %v8417_v63  ;;  %4632 = vmatprep.subr.mxu1 %v7407_v14  ;;  %v8424_v63 = vand.u32 4294901760, %v7078_v28  ;;  %v8428_v28 = vand.u32 4294901760, %v7134_v35  ;;  %v8436_v35 = vand.u32 4294901760, %v7337_v45  ;;  %v8441_v45 = vand.u32 4294901760, %v7411_v5 }
 0x199   : > { %4643 = vmatprep.subr.mxu0 %v8418_v50  ;;  %4633 = vmatpush3.msra.mxu1 %v7418_v16  ;;  %v8445_v5 = vand.u32 4294901760, %v7446_v20  ;;  %v8450_v11 = vand.u32 4294901760, %v8449_v52  ;;  %v8455_v20 = vld [vmem:[#allocation30_spill] sm:$0xff] }
 0x19a   : > { %4644 = vmatpush3.msra.mxu0 %v8419_v12  ;;  %4634 = vmatprep.subr.mxu1 %v7424_v41 }
 0x19b   : > { %4645 = vmatprep.subr.mxu0 %v8420_v47  ;;  %4635 = vmatpush3.msra.mxu1 %v7426_v17 }
 0x19c   : > { %3481 = vmatprep.mubr.f32.mxu1 %v8421_v24  ;;  %4646 = vmatpush3.msra.mxu0 %v8422_v57 }
 0x19d   : > { %3485 = vmatmul.mubr.f32.vlgmr.msra.gmra.mxu1 %v8423_v19  ;;  %4647 = vmatprep.subr.mxu0 %v8424_v63 }
 0x19e   : > { %4674 = vmatprep.subr.mxu1 %v6948_v18  ;;  %4648 = vmatpush3.msra.mxu0 %v8425_v37  ;;  %v8429_v18 = vand.u32 4294901760, %v8393_v31  ;;  %v3937_v31 = vpop.f32.mrf.mxu1 }
 0x19f   : > { %4675 = vmatpush3.msra.mxu1 %v6956_v7  ;;  %4649 = vmatprep.subr.mxu0 %v8426_v38  ;;  %v8430_v7 = vand.u32 4294901760, %v8395_v8  ;;  %v3938_v2 = vadd.f32 %v3937_v31, %v3936_v62 }
 0x1a0   : > { %4676 = vmatprep.subr.mxu1 %v6964_v26  ;;  %4650 = vmatpush3.msra.mxu0 %v8427_v36  ;;  %v8431_v26 = vand.u32 4294901760, %v8397_v43 }
 0x1a1   : > { %4677 = vmatpush3.msra.mxu1 %v6972_v0  ;;  %4651 = vmatprep.subr.mxu0 %v8428_v28  ;;  %v8432_v0 = vand.u32 4294901760, %v7256_v29  ;;  %v8439_v29 = vld [vmem:[#allocation17_spill] sm:$0xff] }
 0x1a2   : > { %4678 = vmatprep.subr.mxu1 %v8392_v25  ;;  %4652 = vmatpush3.msra.mxu0 %v8429_v18  ;;  %v8440_v13 = vand.u32 4294901760, %v8439_v29 }
 0x1a3   : > { %4679 = vmatpush3.msra.mxu1 %v8394_v3  ;;  %4653 = vmatprep.subr.mxu0 %v8430_v7  ;;  %v4006_v3 = vpop.f32.mrf.mxu1 }
 0x1a4   : > { %4680 = vmatprep.subr.mxu1 %v8396_v4  ;;  %4654 = vmatpush3.msra.mxu0 %v8431_v26 }
 0x1a5   : > { %4681 = vmatpush3.msra.mxu1 %v8398_v42  ;;  %4655 = vmatprep.subr.mxu0 %v8432_v0  ;;  %v4007_v8 = vpop.f32.mrf.mxu1 }
 0x1a6   : > { %4682 = vmatprep.subr.mxu1 %v8399_v27  ;;  %4656 = vmatpush3.msra.mxu0 %v8433_v58  ;;  %v4008_v12 = vadd.f32 %v4007_v8, %v4006_v3 }
 0x1a7   : > { %4683 = vmatpush3.msra.mxu1 %v8400_v60  ;;  %4657 = vmatprep.subr.mxu0 %v8434_v15  ;;  %v4076_v4 = vpop.f32.mrf.mxu1 }
 0x1a8   : > { %4684 = vmatprep.subr.mxu1 %v8401_v46  ;;  %4658 = vmatpush3.msra.mxu0 %v8435_v1 }
 0x1a9   : > { %4685 = vmatpush3.msra.mxu1 %v8403_v9  ;;  %4659 = vmatprep.subr.mxu0 %v8436_v35  ;;  %v4077_v43 = vpop.f32.mrf.mxu1 }
 0x1aa   : > { %4686 = vmatprep.subr.mxu1 %v8404_v6  ;;  %4660 = vmatpush3.msra.mxu0 %v8437_v40  ;;  %v4078_v37 = vadd.f32 %v4077_v43, %v4076_v4 }
 0x1ab   : > { %4687 = vmatpush3.msra.mxu1 %v8405_v56  ;;  %4661 = vmatprep.subr.mxu0 %v8438_v48  ;;  %v4146_v42 = vpop.f32.mrf.mxu1 }
 0x1ac   : > { %4688 = vmatprep.subr.mxu1 %v8406_v44  ;;  %4662 = vmatpush3.msra.mxu0 %v8440_v13 }
 0x1ad   : > { %4689 = vmatpush3.msra.mxu1 %v8407_v54  ;;  %4663 = vmatprep.subr.mxu0 %v8441_v45  ;;  %v4147_v27 = vpop.f32.mrf.mxu1 }
 0x1ae   : > { %4690 = vmatprep.subr.mxu1 %v8408_v10  ;;  %4664 = vmatpush3.msra.mxu0 %v8442_v49  ;;  %v8448_v10 = vld [vmem:[#allocation15_spill] sm:$0xff]  ;;  %v4148_v0 = vadd.f32 %v4147_v27, %v4146_v42 }
 0x1af   : > { %4691 = vmatpush3.msra.mxu1 %v8409_v55  ;;  %4665 = vmatprep.subr.mxu0 %v8443_v23  ;;  %v8453_v55 = vld [vmem:[#allocation23_spill] sm:$0xff]  ;;  %v4216_v60 = vpop.f32.mrf.mxu1 }
 0x1b0   : > { %4692 = vmatprep.subr.mxu1 %v8410_v32  ;;  %4666 = vmatpush3.msra.mxu0 %v8444_v53  ;;  %v8451_v32 = vld [vmem:[#allocation31_spill] sm:$0xff] }
 0x1b1   : > { %4693 = vmatpush3.msra.mxu1 %v8411_v59  ;;  %4667 = vmatprep.subr.mxu0 %v8445_v5  ;;  %v8452_v61 = vand.u32 4294901760, %v8451_v32  ;;  %v8454_v59 = vld [vmem:[#allocation26_spill] sm:$0xff]  ;;  %v4217_v9 = vpop.f32.mrf.mxu1 }
 0x1b2   : > { %4694 = vmatprep.subr.mxu1 %v8446_v30  ;;  %4668 = vmatpush3.msra.mxu0 %v8447_v51  ;;  %v4218_v29 = vadd.f32 %v4217_v9, %v4216_v60 }
 0x1b3   : > { %4695 = vmatpush3.msra.mxu1 %v8448_v10  ;;  %4669 = vmatprep.subr.mxu0 %v8450_v11  ;;  %v4286_v54 = vpop.f32.mrf.mxu1 }
 0x1b4   : > { %4696 = vmatprep.subr.mxu1 %v7289_v34  ;;  %4670 = vmatpush3.msra.mxu0 %v8452_v61  ;;  %v3901_v34 = vpop.f32.mrf.mxu0 }
 0x1b5   : > { %3651 = vmatprep.mubr.f32.mxu0 %v8453_v55  ;;  %4697 = vmatpush3.msra.mxu1 %v8454_v59  ;;  %v4287_v19 = vpop.f32.mrf.mxu1 }
 0x1b6   : > { %3653 = vmatmul.mubr.f32.vlgmr.msra.gmra.mxu0 %v8455_v20  ;;  %4698 = vmatprep.subr.mxu1 %v7349_v39  ;;  %v3902_v39 = vpop.f32.mrf.mxu0  ;;  %v4288_v5 = vadd.f32 %v4287_v19, %v4286_v54 }
 0x1b7   : > { %3755 = vmatprep.mubr.f32.mxu1 %v8453_v55  ;;  %4699 = vmatpush3.msra.mxu1 %v7323_v33  ;;  %v3903_v6 = vadd.f32 %v3902_v39, %v3901_v34 }
 0x1b8   : > { %4700 = vmatprep.subr.mxu1 %v8415_v22  ;;  %v3971_v25 = vpop.f32.mrf.mxu0 }
 0x1b9   : > { %4701 = vmatpush3.msra.mxu1 %v7334_v21  ;;  %v655_v50 = vadd.f32 %v3938_v2, %v3903_v6 }
 0x1ba   : > { %4702 = vmatprep.subr.mxu1 %v7407_v14  ;;  %v3972_v33 = vpop.f32.mrf.mxu0 }
 0x1bb   : > { %4703 = vmatpush3.msra.mxu1 %v7418_v16  ;;  %v3973_v56 = vadd.f32 %v3972_v33, %v3971_v25 }
 0x1bc   : > { %4704 = vmatprep.subr.mxu1 %v7424_v41  ;;  %v4041_v22 = vpop.f32.mrf.mxu0 }
 0x1bd   : > { %4705 = vmatpush3.msra.mxu1 %v7426_v17  ;;  %v793_v24 = vadd.f32 %v3973_v56, %v655_v50 }
 0x1be   : > { %3757 = vmatmul.mubr.f32.vlgmr.msra.gmra.mxu1 %v8455_v20  ;;  %v4042_v21 = vpop.f32.mrf.mxu0 }
 0x1bf   : > { %v4043_v57 = vadd.f32 %v4042_v21, %v4041_v22  ;;  %v901_v63 = vadd.f32 %v4008_v12, %v793_v24 }
 0x1c0   : > { %v4111_v14 = vpop.f32.mrf.mxu0 }
 0x1c1   : > { %v1069_v28 = vadd.f32 %v4043_v57, %v901_v63 }
 0x1c2   : > { %v4112_v16 = vpop.f32.mrf.mxu0 }
 0x1c3   : > { %v4113_v18 = vadd.f32 %v4112_v16, %v4111_v14  ;;  %v1173_v26 = vadd.f32 %v4078_v37, %v1069_v28 }
 0x1c4   : > { %v4181_v41 = vpop.f32.mrf.mxu0 }
 0x1c5   : > { %v1285_v15 = vadd.f32 %v4113_v18, %v1173_v26 }
 0x1c6   : > { %v4182_v17 = vpop.f32.mrf.mxu0 }
 0x1c7   : > { %v4183_v1 = vadd.f32 %v4182_v17, %v4181_v41  ;;  %v1517_v48 = vadd.f32 %v4148_v0, %v1285_v15 }
 0x1c8   : > { %v4251_v46 = vpop.f32.mrf.mxu0 }
 0x1c9   : > { %v1655_v45 = vadd.f32 %v4183_v1, %v1517_v48 }
 0x1ca   : > { %v4252_v44 = vpop.f32.mrf.mxu0 }
 0x1cb   : > { %v4253_v49 = vadd.f32 %v4252_v44, %v4251_v46  ;;  %v1763_v53 = vadd.f32 %v4218_v29, %v1655_v45 }
 0x1cc   : > { %v4321_v47 = vpop.f32.mrf.mxu0 }
 0x1cd   : > { %v1931_v10 = vadd.f32 %v4253_v49, %v1763_v53 }
 0x1ce   : > { %v4322_v38 = vpop.f32.mrf.mxu0 }
 0x1cf   : > { %v4323_v52 = vadd.f32 %v4322_v38, %v4321_v47  ;;  %v2035_v32 = vadd.f32 %v4288_v5, %v1931_v10 }
 0x1d1   : > { %v2147_v59 = vadd.f32 %v4323_v52, %v2035_v32 }
 0x1d5   : > { %v4356_v36 = vpop.f32.mrf.mxu1 }
 0x1d7   : > { %v4357_v58 = vpop.f32.mrf.mxu1 }
 0x1d8   : > { %v4358_v61 = vadd.f32 %v4357_v58, %v4356_v36 }
 0x1da   : > { %v2379_v62 = vadd.f32 %v4358_v61, %v2147_v59 }
 0x1ee   : > { %v4391_v7 = vpop.f32.mrf.mxu0 }
 0x1f0   : > { %v4392_v35 = vpop.f32.mrf.mxu0 }
 0x1f1   : > { %v4393_v20 = vadd.f32 %v4392_v35, %v4391_v7 }
 0x1f3   : > { %v2517_v33 = vadd.f32 %v4393_v20, %v2379_v62 }
 0x1f7   : > { %v4426_v40 = vpop.f32.mrf.mxu1 }
 0x1f9   : > { %v4427_v23 = vpop.f32.mrf.mxu1 }
 0x1fa   : > { %v4428_v25 = vadd.f32 %v4427_v23, %v4426_v40 }
 0x1fc   : > { %v2625_v8 = vadd.f32 %v4428_v25, %v2517_v33 }
 0x210   : > { %v4461_v13 = vpop.f32.mrf.mxu0 }
 0x212   : > { %v4462_v30 = vpop.f32.mrf.mxu0 }
 0x213   : > { %v4463_v3 = vadd.f32 %v4462_v30, %v4461_v13 }
 0x215   : > { %v2793_v43 = vadd.f32 %v4463_v3, %v2625_v8 }
 0x219   : > { %v4496_v51 = vpop.f32.mrf.mxu1 }
 0x21b   : > { %v4497_v55 = vpop.f32.mrf.mxu1 }
 0x21c   : > { %v4498_v21 = vadd.f32 %v4497_v55, %v4496_v51 }
 0x21e   : > { %v2897_v41 = vadd.f32 %v4498_v21, %v2793_v43 }
 0x232   : > { %v4531_v11 = vpop.f32.mrf.mxu0 }
 0x234   : > { %v4532_v34 = vpop.f32.mrf.mxu0 }
 0x235   : > { %v4533_v16 = vadd.f32 %v4532_v34, %v4531_v11 }
 0x237   : > { %v3009_v60 = vadd.f32 %v4533_v16, %v2897_v41 }
 0x23b   : > { %v4566_v39 = vpop.f32.mrf.mxu1 }
 0x23d   : > { %v4567_v22 = vpop.f32.mrf.mxu1 }
 0x23e   : > { %v4568_v27 = vadd.f32 %v4567_v22, %v4566_v39 }
 0x240   : > { %v3241_v9 = vadd.f32 %v4568_v27, %v3009_v60 }
 0x254   : > { %v4601_v31 = vpop.f32.mrf.mxu0 }
 0x256   : > { %v4602_v4 = vpop.f32.mrf.mxu0 }
 0x257   : > { %v4603_v46 = vadd.f32 %v4602_v4, %v4601_v31 }
 0x259   : > { %v3379_v56 = vadd.f32 %v4603_v46, %v3241_v9 }
 0x25d   : > { %v4636_v14 = vpop.f32.mrf.mxu1 }
 0x25f   : > { %v4637_v17 = vpop.f32.mrf.mxu1 }
 0x260   : > { %v4638_v6 = vadd.f32 %v4637_v17, %v4636_v14 }
 0x262   : > { %v3487_v50 = vadd.f32 %v4638_v6, %v3379_v56 }
 0x276   : > { %v4671_v42 = vpop.f32.mrf.mxu0 }
 0x278   : > { %v4672_v2 = vpop.f32.mrf.mxu0 }
 0x279   : > { %v4673_v44 = vadd.f32 %v4672_v2, %v4671_v42 }
 0x27b   : > { %v3655_v47 = vadd.f32 %v4673_v44, %v3487_v50 }
 0x27e   : > { %v4706_v54 = vpop.f32.mrf.mxu1 }
 0x280   : > { %v4707_v12 = vpop.f32.mrf.mxu1 }
 0x281   : > { %v4708_v24 = vadd.f32 %v4707_v12, %v4706_v54 }
 0x283   : > { %v3759_v57 = vadd.f32 %v4708_v24, %v3655_v47 }
 0x285   : > { %3763 = vst.msk [vmem:[%s160_s26] sm:$0xf] %vm3762_vm0, %v3759_v57 }
 0x286   : > { %4781 = shalt.err (!%p4778_p5)
}
 0x287   : > { %s4782_s8 = scalar_lea.hbm %s3777_s30, 64  ;;  %s4786_s18 = scalar_lea.hbm %s7723_s2, 128 }
 0x288   : > { %p4783_p6 = scmp.ne.s32.totalorder %s3777_s30, %s4782_s8  ;;  %p4787_p10 = scmp.lt.s32.totalorder %s3777_s30, %s7723_s2 }
 0x289   : > { %p4788_p11 = scmp.lt.s32.totalorder %s4786_s18, %s4782_s8 }
 0x28a   : > { %p4784_p7 = pnand %p4783_p6, %p4902_p4 }
 0x28b   : > { %p4789_p12 = por %p4788_p11, %p4787_p10 }
 0x28c   : > { %p4785_p9 = pneg %p4784_p7 }
 0x28e   : > { %p4790_p13 = pnand %p4789_p12, %p4785_p9 }
 0x290   : > { %4793 = shalt.err (!%p4790_p13)
}
 0x291   : > { %4709 = dma.vmem_to_hbm [thread:$0]  (%p4902_p4), %s3780_s27, 64, %s3777_s30, %s3765_s3  }
 0x292 PF: > { %p4715_p0 = scmp.ge.s32.totalorder %s4844_s14, 2  ;;  %s3791_s23 = sand.u32 1, %s4824_s9  }
 0x293   : > { %s3792_s24 = scalar_lea.sflag [#allocation3], %s3791_s23 }
 0x294   : > { %p4712_p1 = pnand %p4715_p0, %p4909_p8 }
 0x296   : > { %p4713_p2 = pneg %p4712_p1 }
 0x298   : > { %4819 = dma.done.wait (%p4713_p2), %s3792_s24, 64  }
 0x299   : > { %4821 = vsyncadd (%p4713_p2), %s3792_s24, 4294967232  ;;  %s15_s14 = sadd.s32 1, %s4844_s14   ;;  %s8456_s9 = smov %s4828_s10 }
 0x29a   : > { %p12_p3 = scmp.ge.s32.totalorder %s15_s14, 4   ;;  %s8457_s10 = smov %s4832_s11 }
 0x29b   : > { %s8458_s11 = smov %s4915_s22  ;;  %s8459_s12 = smov %s4840_s13 }
 0x29c   : > { %s8460_s13 = smov %s8462_s17  ;;  %14 = sbr.rel (!%p12_p3) target bundleno = 4 (0x4), region = 63 }
 0x2a1   :  { %3797 = vsyncpa [#allocation3], 1 }
 0x2a2   :  { %3799 = vsyncpa [#allocation3 + $0x1], 1 }

</bundles_post_ra>
